<compile_context>
chip_gen: v7x
topology: tpu7x:2x2x1
jax: 0.10.0
libtpu: 0.0.40
codegen_flags: <defaults>
</compile_context>

<pallas_src>
import functools
import math

import jax
import jax.numpy as jnp
import numpy as np
from jax.experimental import pallas as pl
from jax.experimental.pallas import tpu as pltpu

_SQRT_2_OVER_PI = math.sqrt(2.0 / math.pi)


# ----------------------------------------------------------------------------
# Kernel
# ----------------------------------------------------------------------------
def _mdt_block_kernel(
    x_ref, c_ref, rel_ref,
    w_ada_ref, b_ada_ref,
    w_qkv_ref, b_qkv_ref,
    w_proj_ref, b_proj_ref,
    w_fc1_ref, b_fc1_ref,
    w_fc2_ref, b_fc2_ref,
    o_ref,
    *, num_heads, head_dim, eps, bf16_softmax_exp, approx_softmax_recip,
):
    f32 = jnp.float32
    bf = w_qkv_ref.dtype                       # MXU compute dtype (bf16)
    TB, N, C = x_ref.shape
    M = TB * N
    H, hd = num_heads, head_dim

    x = x_ref[...].astype(f32)                         # (TB, N, C)
    c = c_ref[...].reshape(TB, C).astype(f32)          # (TB, 1, C) -> (TB, C)

    # ---- adaLN-Zero: SiLU(c) @ W_ada -> (TB, 6C) in ONE fused matmul --------
    c_act = (c * jax.nn.sigmoid(c)).astype(bf)
    mod = (jnp.dot(c_act, w_ada_ref[...], preferred_element_type=f32)
           + b_ada_ref[...].astype(f32))               # (TB, 6C)
    shift_msa = mod[:, 0 * C:1 * C]
    scale_msa = mod[:, 1 * C:2 * C]
    gate_msa = mod[:, 2 * C:3 * C]
    shift_mlp = mod[:, 3 * C:4 * C]
    scale_mlp = mod[:, 4 * C:5 * C]
    gate_mlp = mod[:, 5 * C:6 * C]

    def layernorm(v):  # elementwise_affine=False, eps=1e-6
        mu = jnp.mean(v, axis=-1, keepdims=True)
        var = jnp.mean((v - mu) ** 2, axis=-1, keepdims=True)
        return (v - mu) * jax.lax.rsqrt(var + eps)

    # ------------------------------ attention --------------------------------
    h = layernorm(x) * (1.0 + scale_msa[:, None, :]) + shift_msa[:, None, :]
    h2d = h.reshape(M, C).astype(bf)                    # (TB*N, C)

    # ONE fused QKV projection: full MXU output width & contraction depth.
    # Softmax scale already folded into the q columns (pre-scaled q).
    qkv = (jnp.dot(h2d, w_qkv_ref[...], preferred_element_type=f32)
           + b_qkv_ref[...].astype(f32))                # (TB*N, 3C)

    head_outs = []
    for hh in range(H):   # static lane-offset slices of the fused qkv output
        q = qkv[:, 0 * C + hh * hd: 0 * C + (hh + 1) * hd]
        k = qkv[:, 1 * C + hh * hd: 1 * C + (hh + 1) * hd]
        v = qkv[:, 2 * C + hh * hd: 2 * C + (hh + 1) * hd]
        q3 = q.reshape(TB, N, hd).astype(bf)
        k3 = k.reshape(TB, N, hd).astype(bf)
        v3 = v.reshape(TB, N, hd).astype(bf)

        # Batched over TB; contract on head_dim directly (no k.T materialized).
        logits = jnp.einsum("bqd,bkd->bqk", q3, k3,
                            preferred_element_type=f32)         # (TB, N, N)
        logits = logits + rel_ref[hh].astype(f32)[None, :, :]
        logits = logits - jnp.max(logits, axis=-1, keepdims=True)
        if bf16_softmax_exp:
            # v6e/v7x: bf16 EUP path roughly doubles exp throughput; the sum
            # (denominator) stays f32.
            p = jnp.exp(logits.astype(bf)).astype(f32)
        else:
            p = jnp.exp(logits)
        denom = jnp.sum(p, axis=-1, keepdims=True)
        if approx_softmax_recip:
            p = p * pl.reciprocal(denom, approx=True)   # EUP slot, ~1e-3 error
        else:
            p = p / denom

        o_h = jnp.einsum("bqk,bkd->bqd", p.astype(bf), v3,
                         preferred_element_type=f32)             # (TB, N, hd)
        head_outs.append(o_h.reshape(M, hd))

    # Stage all heads into one lane-dense (TB*N, C) operand, then a single
    # full-contraction-depth output projection.
    attn_in = jnp.concatenate(head_outs, axis=-1).astype(bf)     # (TB*N, C)
    attn_out = (jnp.dot(attn_in, w_proj_ref[...], preferred_element_type=f32)
                + b_proj_ref[...].astype(f32))                   # (TB*N, C)
    x1 = x + gate_msa[:, None, :] * attn_out.reshape(TB, N, C)

    # --------------------------------- MLP -----------------------------------
    h2 = layernorm(x1) * (1.0 + scale_mlp[:, None, :]) + shift_mlp[:, None, :]
    h2d2 = h2.reshape(M, C).astype(bf)
    Kc = w_fc1_ref.shape[0]          # number of hidden-dim chunks

    def mlp_chunk(j, acc):
        a = (jnp.dot(h2d2, w_fc1_ref[j], preferred_element_type=f32)
             + b_fc1_ref[j].astype(f32))                          # (TB*N, t)
        # GELU(approximate='tanh') in f32 (VPU/EUP).
        g = 0.5 * a * (1.0 + jnp.tanh(_SQRT_2_OVER_PI
                                      * (a + 0.044715 * a * a * a)))
        return acc + jnp.dot(g.astype(bf), w_fc2_ref[j],
                             preferred_element_type=f32)          # (TB*N, C)

    acc0 = jnp.zeros((M, C), f32)
    if Kc == 1:
        mlp_acc = mlp_chunk(0, acc0)
    else:
        # Only one (TB*N, t) f32 hidden chunk live at a time (VMEM-friendly).
        mlp_acc = jax.lax.fori_loop(0, Kc, mlp_chunk, acc0)
    mlp_out = mlp_acc + b_fc2_ref[...].astype(f32)
    x2 = x1 + gate_mlp[:, None, :] * mlp_out.reshape(TB, N, C)

    o_ref[...] = x2.astype(o_ref.dtype)


# ----------------------------------------------------------------------------
# Wrapper helpers
# ----------------------------------------------------------------------------
def _vmem_capacity_bytes():
    mib = 1 << 20
    try:
        cap = int(getattr(pltpu.get_tpu_info(), "vmem_capacity_bytes", 0))
        if cap > 0:
            return cap
    except Exception:
        pass
    kind = ""
    try:
        kind = jax.devices()[0].device_kind.lower()
    except Exception:
        pass
    # v5e / v6e have 128 MiB VMEM per TensorCore; be conservative otherwise
    # (v7x has 64 MiB per TC).
    if "v5" in kind or "v6" in kind:
        return 128 * mib
    return 64 * mib


def _pick_hidden_tile(mlp_hidden, target=512):
    """Largest divisor of mlp_hidden <= target, preferring multiples of 128."""
    if mlp_hidden <= target:
        return mlp_hidden
    best = None
    for t in range(target, 0, -1):
        if mlp_hidden % t == 0:
            if t % 128 == 0:
                return t
            if best is None:
                best = t
    return best or mlp_hidden


def _estimate_vmem_bytes(TB, N, C, mlp_hidden, hidden_tile, H,
                         x_bytes=4, w_bytes=2):
    """Rough per-grid-step VMEM footprint (weights single-buffered)."""
    M = TB * N
    weights = w_bytes * (6 * C * C + 3 * C * C + C * C
                         + 2 * C * mlp_hidden + H * N * N)
    biases = 4 * (6 * C + 3 * C + C + mlp_hidden + C)
    io = 2 * 2 * x_bytes * TB * N * C                 # x + out, double-buffered
    # f32 working set: x/h/x1/h2/attn_out/mlp_acc (~6xC), fused qkv (3C),
    # one hidden chunk (+gelu temp), one head's (TB,N,N) logits/probs.
    acts = 4 * M * (6 * C + 3 * C + 2 * hidden_tile) + 4 * TB * N * N * 3
    return weights + biases + io + acts


def _pick_block_batch(B, N, C, mlp_hidden, hidden_tile, H, x_bytes, budget):
    """Largest TB dividing B that fits the VMEM budget; prefer a grid of >=2
    steps so both v7x TensorCores get work via dimension_semantics."""
    divisors = [d for d in range(1, B + 1) if B % d == 0]

    def fits(d):
        return _estimate_vmem_bytes(d, N, C, mlp_hidden, hidden_tile, H,
                                    x_bytes) <= budget

    preferred = [d for d in divisors if B // d >= 2] or divisors
    fitting = [d for d in preferred if fits(d)]
    if fitting:
        return max(fitting)
    fitting_any = [d for d in divisors if fits(d)]
    return max(fitting_any) if fitting_any else 1


def _pick_vmem_limit(est_bytes, cap_bytes):
    mib = 1 << 20
    want = max(32 * mib, 2 * est_bytes + 16 * mib)
    return int(max(16 * mib, min(want, cap_bytes - 2 * mib)))


# ----------------------------------------------------------------------------
# Wrapper
# ----------------------------------------------------------------------------
def mdt_block_forward(x, c, rel_bias, params, *, num_heads,
                      compute_dtype=jnp.bfloat16,
                      bf16_softmax_exp=False,
                      approx_softmax_recip=True):
    """MDTBlock.forward(x, c) with skip=None, ids_keep=None."""
    B, N, C = x.shape
    H = num_heads
    hd = C // H
    assert H * hd == C
    scale = hd ** (-0.5)
    mlp_hidden = params["w_fc1"].shape[-1]
    f32 = jnp.float32
    cd = compute_dtype

    # ---- repack params: fused layouts, MXU dtype, q-scale folded in ---------
    w_ada = params["w_ada"].astype(cd)                              # (C, 6C)
    b_ada = params["b_ada"].reshape(1, 6 * C).astype(f32)

    # qkv columns are ordered [s, h, d] (s in {q,k,v}); fold hd^-0.5 into q.
    scale_vec = jnp.concatenate(
        [jnp.full((C,), scale, f32), jnp.ones((2 * C,), f32)])
    w_qkv = (params["w_qkv"].astype(f32) * scale_vec[None, :]).astype(cd)
    b_qkv = (params["b_qkv"].reshape(1, 3 * C).astype(f32) * scale_vec[None, :])

    w_proj = params["w_proj"].astype(cd)                            # (C, C)
    b_proj = params["b_proj"].reshape(1, C).astype(f32)

    t = _pick_hidden_tile(mlp_hidden)
    Kc = mlp_hidden // t
    w_fc1 = (params["w_fc1"].reshape(C, Kc, t)
             .transpose(1, 0, 2).astype(cd))                        # (Kc, C, t)
    b_fc1 = (params["b_fc1"].reshape(1, Kc, t)
             .transpose(1, 0, 2).astype(f32))                       # (Kc, 1, t)
    w_fc2 = params["w_fc2"].reshape(Kc, t, C).astype(cd)            # (Kc, t, C)
    b_fc2 = params["b_fc2"].reshape(1, C).astype(f32)

    rel = rel_bias.astype(cd)                                       # (H, N, N)
    c3 = c.reshape(B, 1, C)          # (B,1,C) -> any TB divisor is legal

    x_bytes = jnp.dtype(x.dtype).itemsize
    cap = _vmem_capacity_bytes()
    budget = int(0.7 * cap)
    TB = _pick_block_batch(B, N, C, mlp_hidden, t, H, x_bytes, budget)
    grid = (B // TB,)
    est = _estimate_vmem_bytes(TB, N, C, mlp_hidden, t, H, x_bytes)
    vmem_limit = _pick_vmem_limit(est, cap)

    kernel = functools.partial(
        _mdt_block_kernel, num_heads=H, head_dim=hd, eps=1e-6,
        bf16_softmax_exp=bf16_softmax_exp,
        approx_softmax_recip=approx_softmax_recip)

    args = (x, c3, rel, w_ada, b_ada, w_qkv, b_qkv, w_proj, b_proj,
            w_fc1, b_fc1, w_fc2, b_fc2)

    def build(single_buffer_weights):
        def const_spec(shape):
            idx = lambda b, _n=len(shape): (0,) * _n
            if single_buffer_weights:
                # grid-invariant operand: single-buffer to halve VMEM footprint
                return pl.BlockSpec(shape, idx, pipeline_mode=pl.Buffered(1))
            return pl.BlockSpec(shape, idx)

        grid_spec = pltpu.PrefetchScalarGridSpec(
            num_scalar_prefetch=0,
            grid=grid,
            in_specs=[
                pl.BlockSpec((TB, N, C), lambda b: (b, 0, 0)),      # x
                pl.BlockSpec((TB, 1, C), lambda b: (b, 0, 0)),      # c
                const_spec(rel.shape),
                const_spec(w_ada.shape), const_spec(b_ada.shape),
                const_spec(w_qkv.shape), const_spec(b_qkv.shape),
                const_spec(w_proj.shape), const_spec(b_proj.shape),
                const_spec(w_fc1.shape), const_spec(b_fc1.shape),
                const_spec(w_fc2.shape), const_spec(b_fc2.shape),
            ],
            out_specs=pl.BlockSpec((TB, N, C), lambda b: (b, 0, 0)),
        )
        return pl.pallas_call(
            kernel,
            out_shape=jax.ShapeDtypeStruct((B, N, C), x.dtype),
            grid_spec=grid_spec,
            compiler_params=pltpu.CompilerParams(
                dimension_semantics=("parallel",),
                vmem_limit_bytes=vmem_limit,
            ),
        )

    if hasattr(pl, "Buffered"):
        try:
            return build(single_buffer_weights=True)(*args)
        except Exception as e:  # noqa: BLE001 - filtered below
            msg = str(e).lower()
            if not any(tok in msg for tok in ("buffer", "pipeline_mode")):
                # Real error (VMEM overflow / lowering bug): surface it rather
                # than silently retrying a heavier (double-buffered) config.
                raise
    return build(single_buffer_weights=False)(*args)


# ----------------------------------------------------------------------------
# Relative position index (matches RelativePositionBias.__init__)
# ----------------------------------------------------------------------------
def relative_position_index(window):
    Wh, Ww = window
    coords = np.stack(np.meshgrid(np.arange(Wh), np.arange(Ww), indexing="ij"))
    coords_flatten = coords.reshape(2, -1)
    rel = coords_flatten[:, :, None] - coords_flatten[:, None, :]
    rel = rel.transpose(1, 2, 0).copy()
    rel[:, :, 0] += Wh - 1
    rel[:, :, 1] += Ww - 1
    rel[:, :, 0] *= 2 * Ww - 1
    return rel.sum(-1)  # (Wh*Ww, Wh*Ww)


# ----------------------------------------------------------------------------
# Pure-JAX f32 reference for verification
# ----------------------------------------------------------------------------
def reference_forward(x, c, rel_bias, p, *, num_heads):
    B, N, C = x.shape
    hd = C // num_heads
    sc = hd ** (-0.5)

    def ln(v):
        mu = jnp.mean(v, -1, keepdims=True)
        var = jnp.mean((v - mu) ** 2, -1, keepdims=True)
        return (v - mu) / jnp.sqrt(var + 1e-6)

    mod = (c * jax.nn.sigmoid(c)) @ p["w_ada"] + p["b_ada"][0]
    sm, scm, gm, smp, scp, gmp = jnp.split(mod, 6, axis=-1)

    h = ln(x) * (1 + scm[:, None, :]) + sm[:, None, :]
    qkv = h @ p["w_qkv"] + p["b_qkv"][0]
    qkv = qkv.reshape(B, N, 3, num_heads, hd).transpose(2, 0, 3, 1, 4)
    q, k, v = qkv[0], qkv[1], qkv[2]
    attn = jnp.einsum("bhnd,bhmd->bhnm", q, k) * sc + rel_bias[None]
    attn = jax.nn.softmax(attn, axis=-1)
    o = jnp.einsum("bhnm,bhmd->bhnd", attn, v).transpose(0, 2, 1, 3).reshape(B, N, C)
    o = o @ p["w_proj"] + p["b_proj"][0]
    x = x + gm[:, None, :] * o

    h2 = ln(x) * (1 + scp[:, None, :]) + smp[:, None, :]
    a = h2 @ p["w_fc1"] + p["b_fc1"][0]
    a = 0.5 * a * (1 + jnp.tanh(jnp.sqrt(2 / jnp.pi) * (a + 0.044715 * a ** 3)))
    a = a @ p["w_fc2"] + p["b_fc2"][0]
    return x + gmp[:, None, :] * a


# ----------------------------------------------------------------------------
if __name__ == "__main__":
    B, N, C = 2, 16, 32          # num_patches=16 -> 4x4 window
    num_heads = 4
    mlp_ratio = 4.0
    mlp_hidden = int(C * mlp_ratio)
    Wh = Ww = int(N ** 0.5)
    num_rel_dist = (2 * Wh - 1) * (2 * Ww - 1) + 3

    key = jax.random.PRNGKey(0)
    keys = jax.random.split(key, 10)

    x = jax.random.normal(keys[0], (B, N, C), dtype=jnp.float32)
    c = jax.random.normal(keys[1], (B, C), dtype=jnp.float32)

    init = lambda k, shape, std=0.02: std * jax.random.normal(k, shape, jnp.float32)
    params = {
        "w_ada": init(keys[2], (C, 6 * C)),
        "b_ada": jnp.zeros((1, 6 * C), jnp.float32),
        "w_qkv": init(keys[3], (C, 3 * C)),
        "b_qkv": jnp.zeros((1, 3 * C), jnp.float32),
        "w_proj": init(keys[4], (C, C)),
        "b_proj": jnp.zeros((1, C), jnp.float32),
        "w_fc1": init(keys[5], (C, mlp_hidden)),
        "b_fc1": jnp.zeros((1, mlp_hidden), jnp.float32),
        "w_fc2": init(keys[6], (mlp_hidden, C)),
        "b_fc2": jnp.zeros((1, C), jnp.float32),
    }

    # Relative position bias table + gather (parameter setup, plain JAX glue).
    rel_table = init(keys[7], (num_rel_dist, num_heads))
    rel_idx = jnp.asarray(relative_position_index((Wh, Ww)))        # (N, N)
    rel_bias = jnp.take(rel_table, rel_idx.reshape(-1), axis=0)     # (N*N, H)
    rel_bias = rel_bias.reshape(N, N, num_heads).transpose(2, 0, 1)  # (H, N, N)

    out = mdt_block_forward(x, c, rel_bias, params, num_heads=num_heads)
    out = jax.block_until_ready(out)

    ref = reference_forward(x, c, rel_bias, params, num_heads=num_heads)
    assert out.shape == (B, N, C)
    # bf16 MXU path + approx softmax reciprocal -> relaxed (but tight) tolerance
    np.testing.assert_allclose(np.asarray(out), np.asarray(ref),
                               rtol=1e-2, atol=1e-2)

    print("KERNEL_OK")
</pallas_src>

<mosaic_0001>
module attributes {stable_mosaic.version = 11 : i64} {
  func.func @_mdt_block_kernel(%arg0: i32, %arg1: memref<1x16x32xf32, #tpu.memory_space<vmem>>, %arg2: memref<1x1x32xf32, #tpu.memory_space<vmem>>, %arg3: memref<4x16x16xbf16, #tpu.memory_space<vmem>>, %arg4: memref<32x192xbf16, #tpu.memory_space<vmem>>, %arg5: memref<1x192xf32, #tpu.memory_space<vmem>>, %arg6: memref<32x96xbf16, #tpu.memory_space<vmem>>, %arg7: memref<1x96xf32, #tpu.memory_space<vmem>>, %arg8: memref<32x32xbf16, #tpu.memory_space<vmem>>, %arg9: memref<1x32xf32, #tpu.memory_space<vmem>>, %arg10: memref<1x32x128xbf16, #tpu.memory_space<vmem>>, %arg11: memref<1x1x128xf32, #tpu.memory_space<vmem>>, %arg12: memref<1x128x32xbf16, #tpu.memory_space<vmem>>, %arg13: memref<1x32xf32, #tpu.memory_space<vmem>>, %arg14: memref<1x16x32xf32, #tpu.memory_space<vmem>>) attributes {dimension_semantics = [#tpu.dimension_semantics<parallel>], iteration_bounds = array<i64: 2>, scalar_prefetch = 0 : i64, scratch_operands = 0 : i64, tpu.core_type = #tpu.core_type<tc>, window_params = [{transform_indices = @transform_0, window_bounds = array<i64: 1, 16, 32>}, {transform_indices = @transform_1, window_bounds = array<i64: 1, 1, 32>}, {pipeline_mode = #tpu.pipeline_mode<synchronous>, transform_indices = @transform_2, window_bounds = array<i64: 4, 16, 16>}, {pipeline_mode = #tpu.pipeline_mode<synchronous>, transform_indices = @transform_3, window_bounds = array<i64: 32, 192>}, {pipeline_mode = #tpu.pipeline_mode<synchronous>, transform_indices = @transform_4, window_bounds = array<i64: 1, 192>}, {pipeline_mode = #tpu.pipeline_mode<synchronous>, transform_indices = @transform_5, window_bounds = array<i64: 32, 96>}, {pipeline_mode = #tpu.pipeline_mode<synchronous>, transform_indices = @transform_6, window_bounds = array<i64: 1, 96>}, {pipeline_mode = #tpu.pipeline_mode<synchronous>, transform_indices = @transform_7, window_bounds = array<i64: 32, 32>}, {pipeline_mode = #tpu.pipeline_mode<synchronous>, transform_indices = @transform_8, window_bounds = array<i64: 1, 32>}, {pipeline_mode = #tpu.pipeline_mode<synchronous>, transform_indices = @transform_9, window_bounds = array<i64: 1, 32, 128>}, {pipeline_mode = #tpu.pipeline_mode<synchronous>, transform_indices = @transform_10, window_bounds = array<i64: 1, 1, 128>}, {pipeline_mode = #tpu.pipeline_mode<synchronous>, transform_indices = @transform_11, window_bounds = array<i64: 1, 128, 32>}, {pipeline_mode = #tpu.pipeline_mode<synchronous>, transform_indices = @transform_12, window_bounds = array<i64: 1, 32>}, {transform_indices = @transform_13, window_bounds = array<i64: 1, 16, 32>}]} {
    %c0 = arith.constant 0 : index
    %c0_0 = arith.constant 0 : index
    %c0_1 = arith.constant 0 : index
    %0 = vector.load %arg1[%c0, %c0_0, %c0_1] : memref<1x16x32xf32, #tpu.memory_space<vmem>>, vector<1x16x32xf32>
    %c0_2 = arith.constant 0 : index
    %c0_3 = arith.constant 0 : index
    %c0_4 = arith.constant 0 : index
    %1 = vector.load %arg2[%c0_2, %c0_3, %c0_4] : memref<1x1x32xf32, #tpu.memory_space<vmem>>, vector<1x1x32xf32>
    %2 = vector.shape_cast %1 : vector<1x1x32xf32> to vector<1x32xf32>
    %3 = arith.negf %2 : vector<1x32xf32>
    %4 = math.exp %3 : vector<1x32xf32>
    %cst = arith.constant 1.000000e+00 : f32
    %5 = vector.broadcast %cst : f32 to vector<1x32xf32>
    %6 = arith.addf %5, %4 : vector<1x32xf32>
    %7 = arith.divf %5, %6 : vector<1x32xf32>
    %8 = arith.mulf %2, %7 : vector<1x32xf32>
    %9 = arith.truncf %8 : vector<1x32xf32> to vector<1x32xbf16>
    %c0_5 = arith.constant 0 : index
    %c0_6 = arith.constant 0 : index
    %10 = vector.load %arg4[%c0_5, %c0_6] : memref<32x192xbf16, #tpu.memory_space<vmem>>, vector<32x192xbf16>
    %cst_7 = arith.constant dense<0.000000e+00> : vector<1x192xf32>
    %11 = tpu.matmul %9, %10, %cst_7 {dimension_numbers = #tpu.dot_dimension_numbers<[1], [0], [0], [1], [0, 0, 1, 1], [], []>} : vector<1x32xbf16>, vector<32x192xbf16>, vector<1x192xf32> -> vector<1x192xf32>
    %c0_8 = arith.constant 0 : index
    %c0_9 = arith.constant 0 : index
    %12 = vector.load %arg5[%c0_8, %c0_9] : memref<1x192xf32, #tpu.memory_space<vmem>>, vector<1x192xf32>
    %13 = arith.addf %11, %12 : vector<1x192xf32>
    %14 = vector.extract_strided_slice %13 {offsets = [0, 0], sizes = [1, 32], strides = [1, 1]} : vector<1x192xf32> to vector<1x32xf32>
    %15 = vector.extract_strided_slice %13 {offsets = [0, 32], sizes = [1, 32], strides = [1, 1]} : vector<1x192xf32> to vector<1x32xf32>
    %16 = vector.extract_strided_slice %13 {offsets = [0, 64], sizes = [1, 32], strides = [1, 1]} : vector<1x192xf32> to vector<1x32xf32>
    %17 = vector.extract_strided_slice %13 {offsets = [0, 96], sizes = [1, 32], strides = [1, 1]} : vector<1x192xf32> to vector<1x32xf32>
    %18 = vector.extract_strided_slice %13 {offsets = [0, 128], sizes = [1, 32], strides = [1, 1]} : vector<1x192xf32> to vector<1x32xf32>
    %19 = vector.extract_strided_slice %13 {offsets = [0, 160], sizes = [1, 32], strides = [1, 1]} : vector<1x192xf32> to vector<1x32xf32>
    %cst_10 = arith.constant dense<0.000000e+00> : vector<1x16xf32>
    %20 = vector.multi_reduction <add>, %0, %cst_10 [2] : vector<1x16x32xf32> to vector<1x16xf32>
    %21 = vector.shape_cast %20 : vector<1x16xf32> to vector<1x16x1xf32>
    %cst_11 = arith.constant 3.200000e+01 : f32
    %22 = vector.broadcast %cst_11 : f32 to vector<1x16x1xf32>
    %23 = arith.divf %21, %22 : vector<1x16x1xf32>
    %24 = vector.broadcast %23 : vector<1x16x1xf32> to vector<1x16x32xf32>
    %25 = arith.subf %0, %24 : vector<1x16x32xf32>
    %26 = arith.mulf %25, %25 : vector<1x16x32xf32>
    %cst_12 = arith.constant dense<0.000000e+00> : vector<1x16xf32>
    %27 = vector.multi_reduction <add>, %26, %cst_12 [2] : vector<1x16x32xf32> to vector<1x16xf32>
    %28 = vector.shape_cast %27 : vector<1x16xf32> to vector<1x16x1xf32>
    %cst_13 = arith.constant 3.200000e+01 : f32
    %29 = vector.broadcast %cst_13 : f32 to vector<1x16x1xf32>
    %30 = arith.divf %28, %29 : vector<1x16x1xf32>
    %31 = vector.broadcast %23 : vector<1x16x1xf32> to vector<1x16x32xf32>
    %32 = arith.subf %0, %31 : vector<1x16x32xf32>
    %cst_14 = arith.constant 9.99999997E-7 : f32
    %33 = vector.broadcast %cst_14 : f32 to vector<1x16x1xf32>
    %34 = arith.addf %30, %33 : vector<1x16x1xf32>
    %35 = math.rsqrt %34 : vector<1x16x1xf32>
    %36 = vector.broadcast %35 : vector<1x16x1xf32> to vector<1x16x32xf32>
    %37 = arith.mulf %32, %36 : vector<1x16x32xf32>
    %38 = vector.shape_cast %15 : vector<1x32xf32> to vector<1x1x32xf32>
    %cst_15 = arith.constant 1.000000e+00 : f32
    %39 = vector.broadcast %cst_15 : f32 to vector<1x1x32xf32>
    %40 = arith.addf %39, %38 : vector<1x1x32xf32>
    %41 = vector.broadcast %40 : vector<1x1x32xf32> to vector<1x16x32xf32>
    %42 = arith.mulf %37, %41 : vector<1x16x32xf32>
    %43 = vector.shape_cast %14 : vector<1x32xf32> to vector<1x1x32xf32>
    %44 = vector.broadcast %43 : vector<1x1x32xf32> to vector<1x16x32xf32>
    %45 = arith.addf %42, %44 : vector<1x16x32xf32>
    %46 = vector.shape_cast %45 : vector<1x16x32xf32> to vector<16x32xf32>
    %47 = arith.truncf %46 : vector<16x32xf32> to vector<16x32xbf16>
    %c0_16 = arith.constant 0 : index
    %c0_17 = arith.constant 0 : index
    %48 = vector.load %arg6[%c0_16, %c0_17] : memref<32x96xbf16, #tpu.memory_space<vmem>>, vector<32x96xbf16>
    %cst_18 = arith.constant dense<0.000000e+00> : vector<16x96xf32>
    %49 = tpu.matmul %47, %48, %cst_18 {dimension_numbers = #tpu.dot_dimension_numbers<[1], [0], [0], [1], [0, 0, 1, 1], [], []>} : vector<16x32xbf16>, vector<32x96xbf16>, vector<16x96xf32> -> vector<16x96xf32>
    %c0_19 = arith.constant 0 : index
    %c0_20 = arith.constant 0 : index
    %50 = vector.load %arg7[%c0_19, %c0_20] : memref<1x96xf32, #tpu.memory_space<vmem>>, vector<1x96xf32>
    %51 = vector.broadcast %50 : vector<1x96xf32> to vector<16x96xf32>
    %52 = arith.addf %49, %51 : vector<16x96xf32>
    %53 = vector.extract_strided_slice %52 {offsets = [0, 0], sizes = [16, 8], strides = [1, 1]} : vector<16x96xf32> to vector<16x8xf32>
    %54 = vector.extract_strided_slice %52 {offsets = [0, 32], sizes = [16, 8], strides = [1, 1]} : vector<16x96xf32> to vector<16x8xf32>
    %55 = vector.extract_strided_slice %52 {offsets = [0, 64], sizes = [16, 8], strides = [1, 1]} : vector<16x96xf32> to vector<16x8xf32>
    %56 = vector.shape_cast %53 : vector<16x8xf32> to vector<1x16x8xf32>
    %57 = arith.truncf %56 : vector<1x16x8xf32> to vector<1x16x8xbf16>
    %58 = vector.shape_cast %54 : vector<16x8xf32> to vector<1x16x8xf32>
    %59 = arith.truncf %58 : vector<1x16x8xf32> to vector<1x16x8xbf16>
    %60 = vector.shape_cast %55 : vector<16x8xf32> to vector<1x16x8xf32>
    %61 = arith.truncf %60 : vector<1x16x8xf32> to vector<1x16x8xbf16>
    "tpu.trace_start"() <{level = 10 : i32, message = "bqd,bkd->bqk"}> : () -> ()
    %cst_21 = arith.constant dense<0.000000e+00> : vector<1x16x16xf32>
    %62 = tpu.matmul %57, %59, %cst_21 {dimension_numbers = #tpu.dot_dimension_numbers<[2], [2], [1], [1], [0, 0, 0, 1, 1, 1], [0], [0]>} : vector<1x16x8xbf16>, vector<1x16x8xbf16>, vector<1x16x16xf32> -> vector<1x16x16xf32>
    "tpu.trace_stop"() : () -> ()
    %c0_22 = arith.constant 0 : index
    %c0_23 = arith.constant 0 : index
    %c0_24 = arith.constant 0 : index
    %63 = vector.load %arg3[%c0_22, %c0_23, %c0_24] : memref<4x16x16xbf16, #tpu.memory_space<vmem>>, vector<1x16x16xbf16>
    %64 = vector.shape_cast %63 : vector<1x16x16xbf16> to vector<16x16xbf16>
    %65 = arith.extf %64 : vector<16x16xbf16> to vector<16x16xf32>
    %66 = vector.shape_cast %65 : vector<16x16xf32> to vector<1x16x16xf32>
    %67 = arith.addf %62, %66 : vector<1x16x16xf32>
    %cst_25 = arith.constant dense<0xFF800000> : vector<1x16xf32>
    %68 = vector.multi_reduction <maximumf>, %67, %cst_25 [2] : vector<1x16x16xf32> to vector<1x16xf32>
    %69 = vector.shape_cast %68 : vector<1x16xf32> to vector<1x16x1xf32>
    %70 = vector.broadcast %69 : vector<1x16x1xf32> to vector<1x16x16xf32>
    %71 = arith.subf %67, %70 : vector<1x16x16xf32>
    %72 = math.exp %71 : vector<1x16x16xf32>
    %cst_26 = arith.constant dense<0.000000e+00> : vector<1x16xf32>
    %73 = vector.multi_reduction <add>, %72, %cst_26 [2] : vector<1x16x16xf32> to vector<1x16xf32>
    %74 = vector.shape_cast %73 : vector<1x16xf32> to vector<1x16x1xf32>
    %75 = tpu.reciprocal %74 {approx = true} : vector<1x16x1xf32> -> vector<1x16x1xf32>
    %76 = vector.broadcast %75 : vector<1x16x1xf32> to vector<1x16x16xf32>
    %77 = arith.mulf %72, %76 : vector<1x16x16xf32>
    %78 = arith.truncf %77 : vector<1x16x16xf32> to vector<1x16x16xbf16>
    "tpu.trace_start"() <{level = 10 : i32, message = "bqk,bkd->bqd"}> : () -> ()
    %cst_27 = arith.constant dense<0.000000e+00> : vector<1x16x8xf32>
    %79 = tpu.matmul %78, %61, %cst_27 {dimension_numbers = #tpu.dot_dimension_numbers<[2], [1], [1], [2], [0, 0, 0, 1, 1, 2], [0], [0]>} : vector<1x16x16xbf16>, vector<1x16x8xbf16>, vector<1x16x8xf32> -> vector<1x16x8xf32>
    "tpu.trace_stop"() : () -> ()
    %80 = vector.shape_cast %79 : vector<1x16x8xf32> to vector<16x8xf32>
    %81 = vector.extract_strided_slice %52 {offsets = [0, 8], sizes = [16, 8], strides = [1, 1]} : vector<16x96xf32> to vector<16x8xf32>
    %82 = vector.extract_strided_slice %52 {offsets = [0, 40], sizes = [16, 8], strides = [1, 1]} : vector<16x96xf32> to vector<16x8xf32>
    %83 = vector.extract_strided_slice %52 {offsets = [0, 72], sizes = [16, 8], strides = [1, 1]} : vector<16x96xf32> to vector<16x8xf32>
    %84 = vector.shape_cast %81 : vector<16x8xf32> to vector<1x16x8xf32>
    %85 = arith.truncf %84 : vector<1x16x8xf32> to vector<1x16x8xbf16>
    %86 = vector.shape_cast %82 : vector<16x8xf32> to vector<1x16x8xf32>
    %87 = arith.truncf %86 : vector<1x16x8xf32> to vector<1x16x8xbf16>
    %88 = vector.shape_cast %83 : vector<16x8xf32> to vector<1x16x8xf32>
    %89 = arith.truncf %88 : vector<1x16x8xf32> to vector<1x16x8xbf16>
    "tpu.trace_start"() <{level = 10 : i32, message = "bqd,bkd->bqk"}> : () -> ()
    %cst_28 = arith.constant dense<0.000000e+00> : vector<1x16x16xf32>
    %90 = tpu.matmul %85, %87, %cst_28 {dimension_numbers = #tpu.dot_dimension_numbers<[2], [2], [1], [1], [0, 0, 0, 1, 1, 1], [0], [0]>} : vector<1x16x8xbf16>, vector<1x16x8xbf16>, vector<1x16x16xf32> -> vector<1x16x16xf32>
    "tpu.trace_stop"() : () -> ()
    %c1 = arith.constant 1 : index
    %c0_29 = arith.constant 0 : index
    %c0_30 = arith.constant 0 : index
    %91 = vector.load %arg3[%c1, %c0_29, %c0_30] : memref<4x16x16xbf16, #tpu.memory_space<vmem>>, vector<1x16x16xbf16>
    %92 = vector.shape_cast %91 : vector<1x16x16xbf16> to vector<16x16xbf16>
    %93 = arith.extf %92 : vector<16x16xbf16> to vector<16x16xf32>
    %94 = vector.shape_cast %93 : vector<16x16xf32> to vector<1x16x16xf32>
    %95 = arith.addf %90, %94 : vector<1x16x16xf32>
    %cst_31 = arith.constant dense<0xFF800000> : vector<1x16xf32>
    %96 = vector.multi_reduction <maximumf>, %95, %cst_31 [2] : vector<1x16x16xf32> to vector<1x16xf32>
    %97 = vector.shape_cast %96 : vector<1x16xf32> to vector<1x16x1xf32>
    %98 = vector.broadcast %97 : vector<1x16x1xf32> to vector<1x16x16xf32>
    %99 = arith.subf %95, %98 : vector<1x16x16xf32>
    %100 = math.exp %99 : vector<1x16x16xf32>
    %cst_32 = arith.constant dense<0.000000e+00> : vector<1x16xf32>
    %101 = vector.multi_reduction <add>, %100, %cst_32 [2] : vector<1x16x16xf32> to vector<1x16xf32>
    %102 = vector.shape_cast %101 : vector<1x16xf32> to vector<1x16x1xf32>
    %103 = tpu.reciprocal %102 {approx = true} : vector<1x16x1xf32> -> vector<1x16x1xf32>
    %104 = vector.broadcast %103 : vector<1x16x1xf32> to vector<1x16x16xf32>
    %105 = arith.mulf %100, %104 : vector<1x16x16xf32>
    %106 = arith.truncf %105 : vector<1x16x16xf32> to vector<1x16x16xbf16>
    "tpu.trace_start"() <{level = 10 : i32, message = "bqk,bkd->bqd"}> : () -> ()
    %cst_33 = arith.constant dense<0.000000e+00> : vector<1x16x8xf32>
    %107 = tpu.matmul %106, %89, %cst_33 {dimension_numbers = #tpu.dot_dimension_numbers<[2], [1], [1], [2], [0, 0, 0, 1, 1, 2], [0], [0]>} : vector<1x16x16xbf16>, vector<1x16x8xbf16>, vector<1x16x8xf32> -> vector<1x16x8xf32>
    "tpu.trace_stop"() : () -> ()
    %108 = vector.shape_cast %107 : vector<1x16x8xf32> to vector<16x8xf32>
    %109 = vector.extract_strided_slice %52 {offsets = [0, 16], sizes = [16, 8], strides = [1, 1]} : vector<16x96xf32> to vector<16x8xf32>
    %110 = vector.extract_strided_slice %52 {offsets = [0, 48], sizes = [16, 8], strides = [1, 1]} : vector<16x96xf32> to vector<16x8xf32>
    %111 = vector.extract_strided_slice %52 {offsets = [0, 80], sizes = [16, 8], strides = [1, 1]} : vector<16x96xf32> to vector<16x8xf32>
    %112 = vector.shape_cast %109 : vector<16x8xf32> to vector<1x16x8xf32>
    %113 = arith.truncf %112 : vector<1x16x8xf32> to vector<1x16x8xbf16>
    %114 = vector.shape_cast %110 : vector<16x8xf32> to vector<1x16x8xf32>
    %115 = arith.truncf %114 : vector<1x16x8xf32> to vector<1x16x8xbf16>
    %116 = vector.shape_cast %111 : vector<16x8xf32> to vector<1x16x8xf32>
    %117 = arith.truncf %116 : vector<1x16x8xf32> to vector<1x16x8xbf16>
    "tpu.trace_start"() <{level = 10 : i32, message = "bqd,bkd->bqk"}> : () -> ()
    %cst_34 = arith.constant dense<0.000000e+00> : vector<1x16x16xf32>
    %118 = tpu.matmul %113, %115, %cst_34 {dimension_numbers = #tpu.dot_dimension_numbers<[2], [2], [1], [1], [0, 0, 0, 1, 1, 1], [0], [0]>} : vector<1x16x8xbf16>, vector<1x16x8xbf16>, vector<1x16x16xf32> -> vector<1x16x16xf32>
    "tpu.trace_stop"() : () -> ()
    %c2 = arith.constant 2 : index
    %c0_35 = arith.constant 0 : index
    %c0_36 = arith.constant 0 : index
    %119 = vector.load %arg3[%c2, %c0_35, %c0_36] : memref<4x16x16xbf16, #tpu.memory_space<vmem>>, vector<1x16x16xbf16>
    %120 = vector.shape_cast %119 : vector<1x16x16xbf16> to vector<16x16xbf16>
    %121 = arith.extf %120 : vector<16x16xbf16> to vector<16x16xf32>
    %122 = vector.shape_cast %121 : vector<16x16xf32> to vector<1x16x16xf32>
    %123 = arith.addf %118, %122 : vector<1x16x16xf32>
    %cst_37 = arith.constant dense<0xFF800000> : vector<1x16xf32>
    %124 = vector.multi_reduction <maximumf>, %123, %cst_37 [2] : vector<1x16x16xf32> to vector<1x16xf32>
    %125 = vector.shape_cast %124 : vector<1x16xf32> to vector<1x16x1xf32>
    %126 = vector.broadcast %125 : vector<1x16x1xf32> to vector<1x16x16xf32>
    %127 = arith.subf %123, %126 : vector<1x16x16xf32>
    %128 = math.exp %127 : vector<1x16x16xf32>
    %cst_38 = arith.constant dense<0.000000e+00> : vector<1x16xf32>
    %129 = vector.multi_reduction <add>, %128, %cst_38 [2] : vector<1x16x16xf32> to vector<1x16xf32>
    %130 = vector.shape_cast %129 : vector<1x16xf32> to vector<1x16x1xf32>
    %131 = tpu.reciprocal %130 {approx = true} : vector<1x16x1xf32> -> vector<1x16x1xf32>
    %132 = vector.broadcast %131 : vector<1x16x1xf32> to vector<1x16x16xf32>
    %133 = arith.mulf %128, %132 : vector<1x16x16xf32>
    %134 = arith.truncf %133 : vector<1x16x16xf32> to vector<1x16x16xbf16>
    "tpu.trace_start"() <{level = 10 : i32, message = "bqk,bkd->bqd"}> : () -> ()
    %cst_39 = arith.constant dense<0.000000e+00> : vector<1x16x8xf32>
    %135 = tpu.matmul %134, %117, %cst_39 {dimension_numbers = #tpu.dot_dimension_numbers<[2], [1], [1], [2], [0, 0, 0, 1, 1, 2], [0], [0]>} : vector<1x16x16xbf16>, vector<1x16x8xbf16>, vector<1x16x8xf32> -> vector<1x16x8xf32>
    "tpu.trace_stop"() : () -> ()
    %136 = vector.shape_cast %135 : vector<1x16x8xf32> to vector<16x8xf32>
    %137 = vector.extract_strided_slice %52 {offsets = [0, 24], sizes = [16, 8], strides = [1, 1]} : vector<16x96xf32> to vector<16x8xf32>
    %138 = vector.extract_strided_slice %52 {offsets = [0, 56], sizes = [16, 8], strides = [1, 1]} : vector<16x96xf32> to vector<16x8xf32>
    %139 = vector.extract_strided_slice %52 {offsets = [0, 88], sizes = [16, 8], strides = [1, 1]} : vector<16x96xf32> to vector<16x8xf32>
    %140 = vector.shape_cast %137 : vector<16x8xf32> to vector<1x16x8xf32>
    %141 = arith.truncf %140 : vector<1x16x8xf32> to vector<1x16x8xbf16>
    %142 = vector.shape_cast %138 : vector<16x8xf32> to vector<1x16x8xf32>
    %143 = arith.truncf %142 : vector<1x16x8xf32> to vector<1x16x8xbf16>
    %144 = vector.shape_cast %139 : vector<16x8xf32> to vector<1x16x8xf32>
    %145 = arith.truncf %144 : vector<1x16x8xf32> to vector<1x16x8xbf16>
    "tpu.trace_start"() <{level = 10 : i32, message = "bqd,bkd->bqk"}> : () -> ()
    %cst_40 = arith.constant dense<0.000000e+00> : vector<1x16x16xf32>
    %146 = tpu.matmul %141, %143, %cst_40 {dimension_numbers = #tpu.dot_dimension_numbers<[2], [2], [1], [1], [0, 0, 0, 1, 1, 1], [0], [0]>} : vector<1x16x8xbf16>, vector<1x16x8xbf16>, vector<1x16x16xf32> -> vector<1x16x16xf32>
    "tpu.trace_stop"() : () -> ()
    %c3 = arith.constant 3 : index
    %c0_41 = arith.constant 0 : index
    %c0_42 = arith.constant 0 : index
    %147 = vector.load %arg3[%c3, %c0_41, %c0_42] : memref<4x16x16xbf16, #tpu.memory_space<vmem>>, vector<1x16x16xbf16>
    %148 = vector.shape_cast %147 : vector<1x16x16xbf16> to vector<16x16xbf16>
    %149 = arith.extf %148 : vector<16x16xbf16> to vector<16x16xf32>
    %150 = vector.shape_cast %149 : vector<16x16xf32> to vector<1x16x16xf32>
    %151 = arith.addf %146, %150 : vector<1x16x16xf32>
    %cst_43 = arith.constant dense<0xFF800000> : vector<1x16xf32>
    %152 = vector.multi_reduction <maximumf>, %151, %cst_43 [2] : vector<1x16x16xf32> to vector<1x16xf32>
    %153 = vector.shape_cast %152 : vector<1x16xf32> to vector<1x16x1xf32>
    %154 = vector.broadcast %153 : vector<1x16x1xf32> to vector<1x16x16xf32>
    %155 = arith.subf %151, %154 : vector<1x16x16xf32>
    %156 = math.exp %155 : vector<1x16x16xf32>
    %cst_44 = arith.constant dense<0.000000e+00> : vector<1x16xf32>
    %157 = vector.multi_reduction <add>, %156, %cst_44 [2] : vector<1x16x16xf32> to vector<1x16xf32>
    %158 = vector.shape_cast %157 : vector<1x16xf32> to vector<1x16x1xf32>
    %159 = tpu.reciprocal %158 {approx = true} : vector<1x16x1xf32> -> vector<1x16x1xf32>
    %160 = vector.broadcast %159 : vector<1x16x1xf32> to vector<1x16x16xf32>
    %161 = arith.mulf %156, %160 : vector<1x16x16xf32>
    %162 = arith.truncf %161 : vector<1x16x16xf32> to vector<1x16x16xbf16>
    "tpu.trace_start"() <{level = 10 : i32, message = "bqk,bkd->bqd"}> : () -> ()
    %cst_45 = arith.constant dense<0.000000e+00> : vector<1x16x8xf32>
    %163 = tpu.matmul %162, %145, %cst_45 {dimension_numbers = #tpu.dot_dimension_numbers<[2], [1], [1], [2], [0, 0, 0, 1, 1, 2], [0], [0]>} : vector<1x16x16xbf16>, vector<1x16x8xbf16>, vector<1x16x8xf32> -> vector<1x16x8xf32>
    "tpu.trace_stop"() : () -> ()
    %164 = vector.shape_cast %163 : vector<1x16x8xf32> to vector<16x8xf32>
    %165 = tpu.concatenate %80, %108, %136, %164 in 1 : vector<16x8xf32>, vector<16x8xf32>, vector<16x8xf32>, vector<16x8xf32> -> vector<16x32xf32>
    %166 = arith.truncf %165 : vector<16x32xf32> to vector<16x32xbf16>
    %c0_46 = arith.constant 0 : index
    %c0_47 = arith.constant 0 : index
    %167 = vector.load %arg8[%c0_46, %c0_47] : memref<32x32xbf16, #tpu.memory_space<vmem>>, vector<32x32xbf16>
    %cst_48 = arith.constant dense<0.000000e+00> : vector<16x32xf32>
    %168 = tpu.matmul %166, %167, %cst_48 {dimension_numbers = #tpu.dot_dimension_numbers<[1], [0], [0], [1], [0, 0, 1, 1], [], []>} : vector<16x32xbf16>, vector<32x32xbf16>, vector<16x32xf32> -> vector<16x32xf32>
    %c0_49 = arith.constant 0 : index
    %c0_50 = arith.constant 0 : index
    %169 = vector.load %arg9[%c0_49, %c0_50] : memref<1x32xf32, #tpu.memory_space<vmem>>, vector<1x32xf32>
    %170 = vector.broadcast %169 : vector<1x32xf32> to vector<16x32xf32>
    %171 = arith.addf %168, %170 : vector<16x32xf32>
    %172 = vector.shape_cast %16 : vector<1x32xf32> to vector<1x1x32xf32>
    %173 = vector.shape_cast %171 : vector<16x32xf32> to vector<1x16x32xf32>
    %174 = vector.broadcast %172 : vector<1x1x32xf32> to vector<1x16x32xf32>
    %175 = arith.mulf %174, %173 : vector<1x16x32xf32>
    %176 = arith.addf %0, %175 : vector<1x16x32xf32>
    %cst_51 = arith.constant dense<0.000000e+00> : vector<1x16xf32>
    %177 = vector.multi_reduction <add>, %176, %cst_51 [2] : vector<1x16x32xf32> to vector<1x16xf32>
    %178 = vector.shape_cast %177 : vector<1x16xf32> to vector<1x16x1xf32>
    %cst_52 = arith.constant 3.200000e+01 : f32
    %179 = vector.broadcast %cst_52 : f32 to vector<1x16x1xf32>
    %180 = arith.divf %178, %179 : vector<1x16x1xf32>
    %181 = vector.broadcast %180 : vector<1x16x1xf32> to vector<1x16x32xf32>
    %182 = arith.subf %176, %181 : vector<1x16x32xf32>
    %183 = arith.mulf %182, %182 : vector<1x16x32xf32>
    %cst_53 = arith.constant dense<0.000000e+00> : vector<1x16xf32>
    %184 = vector.multi_reduction <add>, %183, %cst_53 [2] : vector<1x16x32xf32> to vector<1x16xf32>
    %185 = vector.shape_cast %184 : vector<1x16xf32> to vector<1x16x1xf32>
    %cst_54 = arith.constant 3.200000e+01 : f32
    %186 = vector.broadcast %cst_54 : f32 to vector<1x16x1xf32>
    %187 = arith.divf %185, %186 : vector<1x16x1xf32>
    %188 = vector.broadcast %180 : vector<1x16x1xf32> to vector<1x16x32xf32>
    %189 = arith.subf %176, %188 : vector<1x16x32xf32>
    %cst_55 = arith.constant 9.99999997E-7 : f32
    %190 = vector.broadcast %cst_55 : f32 to vector<1x16x1xf32>
    %191 = arith.addf %187, %190 : vector<1x16x1xf32>
    %192 = math.rsqrt %191 : vector<1x16x1xf32>
    %193 = vector.broadcast %192 : vector<1x16x1xf32> to vector<1x16x32xf32>
    %194 = arith.mulf %189, %193 : vector<1x16x32xf32>
    %195 = vector.shape_cast %18 : vector<1x32xf32> to vector<1x1x32xf32>
    %cst_56 = arith.constant 1.000000e+00 : f32
    %196 = vector.broadcast %cst_56 : f32 to vector<1x1x32xf32>
    %197 = arith.addf %196, %195 : vector<1x1x32xf32>
    %198 = vector.broadcast %197 : vector<1x1x32xf32> to vector<1x16x32xf32>
    %199 = arith.mulf %194, %198 : vector<1x16x32xf32>
    %200 = vector.shape_cast %17 : vector<1x32xf32> to vector<1x1x32xf32>
    %201 = vector.broadcast %200 : vector<1x1x32xf32> to vector<1x16x32xf32>
    %202 = arith.addf %199, %201 : vector<1x16x32xf32>
    %203 = vector.shape_cast %202 : vector<1x16x32xf32> to vector<16x32xf32>
    %204 = arith.truncf %203 : vector<16x32xf32> to vector<16x32xbf16>
    %cst_57 = arith.constant 0.000000e+00 : f32
    %205 = vector.broadcast %cst_57 : f32 to vector<16x32xf32>
    %c0_58 = arith.constant 0 : index
    %c0_59 = arith.constant 0 : index
    %c0_60 = arith.constant 0 : index
    %206 = vector.load %arg10[%c0_58, %c0_59, %c0_60] : memref<1x32x128xbf16, #tpu.memory_space<vmem>>, vector<1x32x128xbf16>
    %207 = vector.shape_cast %206 : vector<1x32x128xbf16> to vector<32x128xbf16>
    %cst_61 = arith.constant dense<0.000000e+00> : vector<16x128xf32>
    %208 = tpu.matmul %204, %207, %cst_61 {dimension_numbers = #tpu.dot_dimension_numbers<[1], [0], [0], [1], [0, 0, 1, 1], [], []>} : vector<16x32xbf16>, vector<32x128xbf16>, vector<16x128xf32> -> vector<16x128xf32>
    %c0_62 = arith.constant 0 : index
    %c0_63 = arith.constant 0 : index
    %c0_64 = arith.constant 0 : index
    %209 = vector.load %arg11[%c0_62, %c0_63, %c0_64] : memref<1x1x128xf32, #tpu.memory_space<vmem>>, vector<1x1x128xf32>
    %210 = vector.shape_cast %209 : vector<1x1x128xf32> to vector<1x128xf32>
    %211 = vector.broadcast %210 : vector<1x128xf32> to vector<16x128xf32>
    %212 = arith.addf %208, %211 : vector<16x128xf32>
    %cst_65 = arith.constant 5.000000e-01 : f32
    %213 = vector.broadcast %cst_65 : f32 to vector<16x128xf32>
    %214 = arith.mulf %213, %212 : vector<16x128xf32>
    %cst_66 = arith.constant 4.471500e-02 : f32
    %215 = vector.broadcast %cst_66 : f32 to vector<16x128xf32>
    %216 = arith.mulf %215, %212 : vector<16x128xf32>
    %217 = arith.mulf %216, %212 : vector<16x128xf32>
    %218 = arith.mulf %217, %212 : vector<16x128xf32>
    %219 = arith.addf %212, %218 : vector<16x128xf32>
    %cst_67 = arith.constant 0.797884583 : f32
    %220 = vector.broadcast %cst_67 : f32 to vector<16x128xf32>
    %221 = arith.mulf %220, %219 : vector<16x128xf32>
    %222 = math.tanh %221 : vector<16x128xf32>
    %cst_68 = arith.constant 1.000000e+00 : f32
    %223 = vector.broadcast %cst_68 : f32 to vector<16x128xf32>
    %224 = arith.addf %223, %222 : vector<16x128xf32>
    %225 = arith.mulf %214, %224 : vector<16x128xf32>
    %226 = arith.truncf %225 : vector<16x128xf32> to vector<16x128xbf16>
    %c0_69 = arith.constant 0 : index
    %c0_70 = arith.constant 0 : index
    %c0_71 = arith.constant 0 : index
    %227 = vector.load %arg12[%c0_69, %c0_70, %c0_71] : memref<1x128x32xbf16, #tpu.memory_space<vmem>>, vector<1x128x32xbf16>
    %228 = vector.shape_cast %227 : vector<1x128x32xbf16> to vector<128x32xbf16>
    %cst_72 = arith.constant dense<0.000000e+00> : vector<16x32xf32>
    %229 = tpu.matmul %226, %228, %cst_72 {dimension_numbers = #tpu.dot_dimension_numbers<[1], [0], [0], [1], [0, 0, 1, 1], [], []>} : vector<16x128xbf16>, vector<128x32xbf16>, vector<16x32xf32> -> vector<16x32xf32>
    %230 = arith.addf %205, %229 : vector<16x32xf32>
    %c0_73 = arith.constant 0 : index
    %c0_74 = arith.constant 0 : index
    %231 = vector.load %arg13[%c0_73, %c0_74] : memref<1x32xf32, #tpu.memory_space<vmem>>, vector<1x32xf32>
    %232 = vector.broadcast %231 : vector<1x32xf32> to vector<16x32xf32>
    %233 = arith.addf %230, %232 : vector<16x32xf32>
    %234 = vector.shape_cast %19 : vector<1x32xf32> to vector<1x1x32xf32>
    %235 = vector.shape_cast %233 : vector<16x32xf32> to vector<1x16x32xf32>
    %236 = vector.broadcast %234 : vector<1x1x32xf32> to vector<1x16x32xf32>
    %237 = arith.mulf %236, %235 : vector<1x16x32xf32>
    %238 = arith.addf %176, %237 : vector<1x16x32xf32>
    %c0_75 = arith.constant 0 : index
    %c0_76 = arith.constant 0 : index
    %c0_77 = arith.constant 0 : index
    %239 = vector.load %arg14[%c0_75, %c0_76, %c0_77] : memref<1x16x32xf32, #tpu.memory_space<vmem>>, vector<1x16x32xf32>
    tpu.vector_store %arg14[%c0_75, %c0_76, %c0_77], %238 {strides = array<i32>} : memref<1x16x32xf32, #tpu.memory_space<vmem>>, vector<1x16x32xf32>,
    return
  }
  func.func @transform_0(%arg0: i32) -> (i32, i32, i32) {
    %c0_i32 = arith.constant 0 : i32
    %c0_i32_0 = arith.constant 0 : i32
    %c0_i32_1 = arith.constant 0 : i32
    return %arg0, %c0_i32, %c0_i32_0 : i32, i32, i32
  }
  func.func @transform_1(%arg0: i32) -> (i32, i32, i32) {
    %c0_i32 = arith.constant 0 : i32
    %c0_i32_0 = arith.constant 0 : i32
    %c0_i32_1 = arith.constant 0 : i32
    return %arg0, %c0_i32, %c0_i32_0 : i32, i32, i32
  }
  func.func @transform_2(%arg0: i32) -> (i32, i32, i32) {
    %c0_i32 = arith.constant 0 : i32
    %c0_i32_0 = arith.constant 0 : i32
    %c0_i32_1 = arith.constant 0 : i32
    %c0_i32_2 = arith.constant 0 : i32
    return %c0_i32, %c0_i32_0, %c0_i32_1 : i32, i32, i32
  }
  func.func @transform_3(%arg0: i32) -> (i32, i32) {
    %c0_i32 = arith.constant 0 : i32
    %c0_i32_0 = arith.constant 0 : i32
    %c0_i32_1 = arith.constant 0 : i32
    return %c0_i32, %c0_i32_0 : i32, i32
  }
  func.func @transform_4(%arg0: i32) -> (i32, i32) {
    %c0_i32 = arith.constant 0 : i32
    %c0_i32_0 = arith.constant 0 : i32
    %c0_i32_1 = arith.constant 0 : i32
    return %c0_i32, %c0_i32_0 : i32, i32
  }
  func.func @transform_5(%arg0: i32) -> (i32, i32) {
    %c0_i32 = arith.constant 0 : i32
    %c0_i32_0 = arith.constant 0 : i32
    %c0_i32_1 = arith.constant 0 : i32
    return %c0_i32, %c0_i32_0 : i32, i32
  }
  func.func @transform_6(%arg0: i32) -> (i32, i32) {
    %c0_i32 = arith.constant 0 : i32
    %c0_i32_0 = arith.constant 0 : i32
    %c0_i32_1 = arith.constant 0 : i32
    return %c0_i32, %c0_i32_0 : i32, i32
  }
  func.func @transform_7(%arg0: i32) -> (i32, i32) {
    %c0_i32 = arith.constant 0 : i32
    %c0_i32_0 = arith.constant 0 : i32
    %c0_i32_1 = arith.constant 0 : i32
    return %c0_i32, %c0_i32_0 : i32, i32
  }
  func.func @transform_8(%arg0: i32) -> (i32, i32) {
    %c0_i32 = arith.constant 0 : i32
    %c0_i32_0 = arith.constant 0 : i32
    %c0_i32_1 = arith.constant 0 : i32
    return %c0_i32, %c0_i32_0 : i32, i32
  }
  func.func @transform_9(%arg0: i32) -> (i32, i32, i32) {
    %c0_i32 = arith.constant 0 : i32
    %c0_i32_0 = arith.constant 0 : i32
    %c0_i32_1 = arith.constant 0 : i32
    %c0_i32_2 = arith.constant 0 : i32
    return %c0_i32, %c0_i32_0, %c0_i32_1 : i32, i32, i32
  }
  func.func @transform_10(%arg0: i32) -> (i32, i32, i32) {
    %c0_i32 = arith.constant 0 : i32
    %c0_i32_0 = arith.constant 0 : i32
    %c0_i32_1 = arith.constant 0 : i32
    %c0_i32_2 = arith.constant 0 : i32
    return %c0_i32, %c0_i32_0, %c0_i32_1 : i32, i32, i32
  }
  func.func @transform_11(%arg0: i32) -> (i32, i32, i32) {
    %c0_i32 = arith.constant 0 : i32
    %c0_i32_0 = arith.constant 0 : i32
    %c0_i32_1 = arith.constant 0 : i32
    %c0_i32_2 = arith.constant 0 : i32
    return %c0_i32, %c0_i32_0, %c0_i32_1 : i32, i32, i32
  }
  func.func @transform_12(%arg0: i32) -> (i32, i32) {
    %c0_i32 = arith.constant 0 : i32
    %c0_i32_0 = arith.constant 0 : i32
    %c0_i32_1 = arith.constant 0 : i32
    return %c0_i32, %c0_i32_0 : i32, i32
  }
  func.func @transform_13(%arg0: i32) -> (i32, i32, i32) {
    %c0_i32 = arith.constant 0 : i32
    %c0_i32_0 = arith.constant 0 : i32
    %c0_i32_1 = arith.constant 0 : i32
    return %arg0, %c0_i32, %c0_i32_0 : i32, i32, i32
  }
}

</mosaic_0001>

<bundles_post_ra>
// kernel: tpu_custom_call.1
= control target key start
LH: loop header
LB: loop body
LE: loop exit
PB: predicated region body
PF: predicated region fallthrough
CT: control target
= control target key end

     0   :  { %s2947_s0 = inlined_call_operand.vmem [shape: f32[2,16,32], index: 0, kind: input, shape index: {}]   ;;  %s2948_s1 = inlined_call_operand.vmem [shape: f32[2,1,32], index: 1, kind: input, shape index: {}]   ;;  %s2949_s2 = inlined_call_operand.vmem [shape: bf16[4,16,16], index: 2, kind: input, shape index: {}]   ;;  %s2950_s3 = inlined_call_operand.hbm [shape: bf16[32,192], index: 3, kind: input, shape index: {}]   ;;  %s2951_s4 = inlined_call_operand.hbm [shape: f32[1,192], index: 4, kind: input, shape index: {}]   ;;  %s2952_s5 = inlined_call_operand.vmem [shape: bf16[32,96], index: 5, kind: input, shape index: {}]   ;;  %s2953_s6 = inlined_call_operand.hbm [shape: f32[1,96], index: 6, kind: input, shape index: {}]   ;;  %s2954_s7 = inlined_call_operand.hbm [shape: bf16[32,32], index: 7, kind: input, shape index: {}]   ;;  %s2955_s8 = inlined_call_operand.hbm [shape: f32[1,32], index: 8, kind: input, shape index: {}]   ;;  %s2956_s9 = inlined_call_operand.vmem [shape: bf16[1,32,128], index: 9, kind: input, shape index: {}]   ;;  %s2957_s10 = inlined_call_operand.vmem [shape: f32[1,1,128], index: 10, kind: input, shape index: {}]   ;;  %s2958_s11 = inlined_call_operand.vmem [shape: bf16[1,128,32], index: 11, kind: input, shape index: {}]   ;;  %s2959_s12 = inlined_call_operand.vmem [shape: f32[1,32], index: 12, kind: input, shape index: {}]   ;;  %s2960_s13 = inlined_call_operand.hbm [shape: f32[2,16,32], index: 13, kind: output, shape index: {}]  }
   0x1   :  { %2974 = sst [smem:[#allocation24_spill]] %s2951_s4 }
   0x2   :  { %2975 = sst [smem:[#allocation25_spill]] %s2954_s7 }
   0x3   :  { %2976 = sst [smem:[#allocation26_spill]] %s2960_s13 }
   0x4   :  { %18 = vsyncpa [#allocation3], 0 }
   0x5   :  { %19 = vsyncpa [#allocation6], 0 }
   0x6   :  { %20 = vsyncpa [#allocation9], 0 }
   0x7   :  { %21 = vsyncpa [#allocation4], 0 }
   0x8   :  { %23 = vsyncpa [#allocation4 + $0x1], 0  ;;  %s2469_s25 = smov 0   ;;  %s2471_s26 = smov 0  }
   0x9   :  { %s2473_s27 = smov 0   ;;  %s2475_s28 = smov 0  }
   0xa LB: > { %2977 = sst [smem:[#allocation16_spill]] %s2356_s25  ;;  %s2490_s29 = sadd.s32 4294967295, %s2368_s28   ;;  %s2368_s28 = sphi %s2475_s28, %s3008_s28   ;;  %s2364_s27 = sphi %s2473_s27, %s3011_s27   ;;  %s2360_s26 = sphi %s2471_s26, %s3010_s26   ;;  %s2356_s25 = sphi %s2469_s25, %s3009_s25  }
   0xb   : > { %2978 = sst [smem:[#allocation17_spill]] %s2360_s26  ;;  %s1748_s30 = sadd.s32 4294967294, %s2368_s28  }
   0xc   : > { %2979 = sst [smem:[#allocation18_spill]] %s2364_s27  ;;  %s2494_s14 = sadd.s32 1, %s2368_s28  }
   0xd   : > { %2980 = sst [smem:[#allocation19_spill]] %s2368_s28  ;;  %s319_s15 = sadd.s32 1, %s2364_s27 }
   0xe   : > { %2981 = sst [smem:[#allocation20_spill]] %s2494_s14  ;;  %s316_s16 = ssub.s32 %s2368_s28, %s2494_s14 }
   0xf   : > { %p329_p0 = scmp.ne.s32.totalorder %s2364_s27, %s2360_s26  ;;  %p317_p1 = scmp.eq.s32.totalorder %s316_s16, 0 }
  0x10   : > { %p330_p2 = scmp.eq.s32.totalorder %s2490_s29, 1  ;;  %p335_p3 = scmp.ne.s32.totalorder %s2360_s26, %s2356_s25 }
  0x11   : > { %p336_p4 = scmp.eq.s32.totalorder %s1748_s30, 1  ;;  %p1749_p7 = scmp.ge.s32.totalorder %s2368_s28, 1 }
  0x12   : > { %s2505_s17 = scalar_select %p317_p1, %s2364_s27, %s319_s15  }
  0x13   : > { %p2507_p5 = por %p330_p2, %p329_p0  ;;  %p2511_p6 = por %p336_p4, %p335_p3 }
  0x14   : > { %2982 = sst [smem:[#allocation21_spill]] %s2505_s17  ;;  %p343_p8 = scmp.lt.s32.totalorder %s2368_s28, 3 }
  0x15   : > { %s2983_s18 = scalar_select %p2507_p5, 1, 0 }
  0x16   : > { %s2985_s19 = scalar_select %p2511_p6, 1, 0 }
  0x17   : > { %2984 = sst [smem:[#allocation22_spill]] %s2983_s18  ;;  %p2966_p9 = scmp.eq.s32.totalorder %s2490_s29, 0 }
  0x18   : > { %2986 = sst [smem:[#allocation23_spill]] %s2985_s19  ;;  %p2518_p10 = pnand %p1749_p7, %p343_p8 }
  0x19   : > { %s2370_s21 = smov [#allocation5]   ;;  %s2371_s23 = smov [#allocation8]  }
  0x1a   : > { %s2987_s20 = scalar_select %p2518_p10, 1, 0 }
  0x1b   : > { %s372_s22 = sshll.u32 %s2370_s21, 4  ;;  %p1980_p11 = pneg %p2518_p10  ;;  %s373_s22 = int_to_ptr.vmem [resolvable:$true] %s372_s22 }
  0x1c   : > { %s396_s24 = sshll.u32 %s2371_s23, 4  ;;  %s2372_s15 = smov [#allocation2]   ;;  %s2530_s24 = int_to_ptr.vmem [resolvable:$true] %s396_s24 }
  0x1d   : > { %p2526_p12 = pnand %p2966_p9, %p1980_p11  ;;  %s2532_s16 = sshll.u32 %s2372_s15, 4  ;;  %s359_s16 = int_to_ptr.vmem [resolvable:$true] %s2532_s16 }
  0x1e   : > { %s2989_s4 = sld [smem:[#allocation24_spill]] }
  0x1f   : > { %p2542_p0 = pneg %p2526_p12 }
  0x24   : > { %s2154_s21 = scalar_lea.hbm %s2989_s4, 32 }
  0x25   : > { %p2155_p13 = scmp.ne.s32.totalorder %s2989_s4, %s2154_s21  ;;  %p2161_p3 = scmp.lt.u32.totalorder %s2154_s21, %s2989_s4 }
  0x27   : > { %p2157_p1 = pnand %p2542_p0, %p2155_p13 }
  0x29   : > { %p2158_p2 = pneg %p2157_p1 }
  0x2b   : > { %p2163_p4 = pnand %p2161_p3, %p2158_p2 }
  0x2d   : > { %2166 = shalt.err (!%p2163_p4)
}
  0x2e   : > { %s2167_s27 = scalar_lea.vmem %s373_s22, 32  ;;  %p2175_p9 = scmp.lt.s32.totalorder %s373_s22, %s373_s22 }
  0x2f   : > { %p2168_p7 = scmp.ne.s32.totalorder %s373_s22, %s2167_s27  ;;  %p2176_p6 = scmp.lt.s32.totalorder %s2167_s27, %s2167_s27 }
  0x31   : > { %p2170_p8 = pnand %p2168_p7, %p2542_p0  ;;  %p2177_p5 = por %p2176_p6, %p2175_p9 }
  0x33   : > { %p2171_p11 = pneg %p2170_p8 }
  0x35   : > { %p2178_p10 = pnand %p2177_p5, %p2171_p11 }
  0x37   : > { %2181 = shalt.err (!%p2178_p10)
}
  0x38   : > { %1986 = dma.hbm_to_vmem [thread:$0]  (!%p2526_p12), %s2989_s4, 32, %s373_s22, [#allocation6]  }
  0x39   : > { %s2991_s7 = sld [smem:[#allocation25_spill]] }
  0x3f   : > { %s2182_s21 = scalar_lea.hbm %s2991_s7, 256 }
  0x40   : > { %p2183_p13 = scmp.ne.s32.totalorder %s2991_s7, %s2182_s21  ;;  %p2189_p5 = scmp.lt.u32.totalorder %s2182_s21, %s2991_s7 }
  0x42   : > { %p2185_p1 = pnand %p2183_p13, %p2542_p0 }
  0x44   : > { %p2186_p6 = pneg %p2185_p1 }
  0x46   : > { %p2191_p9 = pnand %p2189_p5, %p2186_p6 }
  0x48   : > { %2194 = shalt.err (!%p2191_p9)
}
  0x49   : > { %s2195_s22 = scalar_lea.vmem %s2530_s24, 256  ;;  %p2203_p4 = scmp.lt.s32.totalorder %s2530_s24, %s2530_s24 }
  0x4a   : > { %p2196_p10 = scmp.ne.s32.totalorder %s2530_s24, %s2195_s22  ;;  %p2204_p7 = scmp.lt.s32.totalorder %s2195_s22, %s2195_s22 }
  0x4c   : > { %p2198_p2 = pnand %p2196_p10, %p2542_p0  ;;  %p2205_p8 = por %p2204_p7, %p2203_p4 }
  0x4e   : > { %p2199_p3 = pneg %p2198_p2 }
  0x50   : > { %p2206_p11 = pnand %p2205_p8, %p2199_p3 }
  0x52   : > { %2209 = shalt.err (!%p2206_p11)
}
  0x53   : > { %s2373_s28 = smov 64   ;;  %s2374_s13 = smov 4  }
  0x54   : > { %1992 = dma.hbm_to_vmem [thread:$0]  (!%p2526_p12), %s2991_s7, 256, %s2530_s24, [#allocation9], %s2373_s28, %s2373_s28, %s2374_s13  }
  0x55   : > { %s2210_s21 = scalar_lea.hbm %s2950_s3, 512 }
  0x56   : > { %p2211_p13 = scmp.ne.s32.totalorder %s2950_s3, %s2210_s21  ;;  %p2217_p5 = scmp.lt.u32.totalorder %s2210_s21, %s2950_s3 }
  0x58   : > { %p2213_p1 = pnand %p2211_p13, %p2542_p0 }
  0x5a   : > { %p2214_p6 = pneg %p2213_p1 }
  0x5c   : > { %p2219_p9 = pnand %p2217_p5, %p2214_p6 }
  0x5e   : > { %2222 = shalt.err (!%p2219_p9)
}
  0x5f   : > { %s2223_s14 = scalar_lea.vmem %s359_s16, 512  ;;  %p2231_p4 = scmp.lt.s32.totalorder %s359_s16, %s359_s16 }
  0x60   : > { %p2224_p10 = scmp.ne.s32.totalorder %s359_s16, %s2223_s14  ;;  %p2232_p7 = scmp.lt.s32.totalorder %s2223_s14, %s2223_s14 }
  0x62   : > { %p2226_p2 = pnand %p2224_p10, %p2542_p0  ;;  %p2233_p8 = por %p2232_p7, %p2231_p4 }
  0x64   : > { %p2227_p3 = pneg %p2226_p2 }
  0x66   : > { %p2234_p11 = pnand %p2233_p8, %p2227_p3 }
  0x68   : > { %2237 = shalt.err (!%p2234_p11)
}
  0x69   : > { %s2375_s24 = smov 128   ;;  %s2376_s28 = smov 8  }
  0x6a   : > { %1983 = dma.hbm_to_vmem [thread:$0]  (!%p2526_p12), %s2950_s3, 512, %s359_s16, [#allocation3], %s2375_s24, %s2375_s24, %s2376_s28  }
  0x6b   : > { %s2377_s17 = smov [#allocation7]   ;;  %s2378_s19 = smov [#allocation10]  }
  0x6c   : > { %s386_s25 = sshll.u32 %s2377_s17, 4  ;;  %s410_s21 = sshll.u32 %s2378_s19, 4  ;;  %s387_s25 = int_to_ptr.vmem [resolvable:$true] %s386_s25  ;;  %s411_s21 = int_to_ptr.vmem [resolvable:$true] %s410_s21 }
  0x6d   : > { %s2238_s22 = scalar_lea.hbm %s2953_s6, 16 }
  0x6e   : > { %p2239_p13 = scmp.ne.s32.totalorder %s2953_s6, %s2238_s22  ;;  %p2245_p5 = scmp.lt.u32.totalorder %s2238_s22, %s2953_s6 }
  0x70   : > { %p2241_p1 = pnand %p2239_p13, %p2542_p0 }
  0x72   : > { %p2242_p6 = pneg %p2241_p1 }
  0x74   : > { %p2247_p9 = pnand %p2245_p5, %p2242_p6 }
  0x76   : > { %2250 = shalt.err (!%p2247_p9)
}
  0x77   : > { %s2251_s16 = scalar_lea.vmem %s387_s25, 16  ;;  %s2258_s24 = scalar_lea.vmem %s387_s25, 32 }
  0x78   : > { %p2252_p10 = scmp.ne.s32.totalorder %s387_s25, %s2251_s16  ;;  %p2259_p4 = scmp.lt.s32.totalorder %s387_s25, %s387_s25 }
  0x79   : > { %p2260_p7 = scmp.lt.s32.totalorder %s2258_s24, %s2251_s16 }
  0x7a   : > { %p2254_p2 = pnand %p2252_p10, %p2542_p0 }
  0x7b   : > { %p2261_p8 = por %p2260_p7, %p2259_p4 }
  0x7c   : > { %p2255_p3 = pneg %p2254_p2 }
  0x7e   : > { %p2262_p11 = pnand %p2261_p8, %p2255_p3 }
  0x80   : > { %2265 = shalt.err (!%p2262_p11)
}
  0x81   : > { %1989 = dma.hbm_to_vmem [thread:$0]  (!%p2526_p12), %s2953_s6, 16, %s387_s25, [#allocation6]  }
  0x82   : > { %s2266_s4 = scalar_lea.hbm %s2955_s8, 16 }
  0x83   : > { %p2267_p13 = scmp.ne.s32.totalorder %s2955_s8, %s2266_s4  ;;  %p2273_p5 = scmp.lt.u32.totalorder %s2266_s4, %s2955_s8 }
  0x85   : > { %p2269_p1 = pnand %p2267_p13, %p2542_p0 }
  0x87   : > { %p2270_p6 = pneg %p2269_p1 }
  0x89   : > { %p2275_p9 = pnand %p2273_p5, %p2270_p6 }
  0x8b   : > { %2278 = shalt.err (!%p2275_p9)
}
  0x8c   : > { %s2279_s27 = scalar_lea.vmem %s411_s21, 16  ;;  %s2286_s25 = scalar_lea.vmem %s411_s21, 32 }
  0x8d   : > { %p2280_p10 = scmp.ne.s32.totalorder %s411_s21, %s2279_s27  ;;  %p2287_p4 = scmp.lt.s32.totalorder %s411_s21, %s411_s21 }
  0x8e   : > { %p2288_p7 = scmp.lt.s32.totalorder %s2286_s25, %s2279_s27 }
  0x8f   : > { %p2282_p2 = pnand %p2280_p10, %p2542_p0 }
  0x90   : > { %p2289_p8 = por %p2288_p7, %p2287_p4 }
  0x91   : > { %p2283_p3 = pneg %p2282_p2 }
  0x93   : > { %p2290_p11 = pnand %p2289_p8, %p2283_p3 }
  0x95   : > { %2293 = shalt.err (!%p2290_p11)
}
  0x96   : > { %1995 = dma.hbm_to_vmem [thread:$0]  (!%p2526_p12), %s2955_s8, 16, %s411_s21, [#allocation9]  }
  0x97   : > { %p2992_p13 = scmp.ne.s32.totalorder %s2987_s20, 0 }
  0x98   : > { %p2993_p1 = scmp.eq.s32.totalorder (!%p2992_p13), %s2490_s29, 0 }
  0x99   : > { %449 = sbr.rel (%p2992_p13) target bundleno = 3298 (0xce2), region = 72 }
  0xa0   : > { %2339 = dma.done.wait (%p2993_p1), [#allocation3], 512   ;;  %p2994_p0 = pmov %p2993_p1 }
  0xa2   : > { %2341 = vsyncadd (%p2994_p0), [#allocation3], 4294966784  ;;  %p2995_p6 = pmov %p2994_p0 }
  0xa3   : > { %p2996_p5 = pmov %p2994_p0 }
  0xa4   : > { %2343 = dma.done.wait (%p2995_p6), [#allocation6], 48  }
  0xa5   : > { %2345 = vsyncadd (%p2996_p5), [#allocation6], 4294967248  ;;  %p2997_p9 = pmov %p2994_p0 }
  0xa6   : > { %p2998_p12 = pmov %p2994_p0 }
  0xa7   : > { %2347 = dma.done.wait (%p2997_p9), [#allocation9], 272  }
  0xa8   : > { %2349 = vsyncadd (%p2998_p12), [#allocation9], 4294967024  ;;  %p512_p10 = scmp.lt.s32.totalorder %s2490_s29, 1  ;;  %v2379_v0 = vmov 0   ;;  %vm568_vm0 = vcmask 261120   ;;  %v2092_v26 = vld [vmem:[%s2952_s5] sm:$0xff]   ;;  %v558_v28 = vlaneseq }
  0xa9   : > { %604 = vmatprep.mubr.bf16.mxu1 %v2379_v0  ;;  %v2086_v6 = vld [vmem:[#allocation2 + $0x4] ss:$8 sps:$4 sm:$0xff]   ;;  %v2088_v7 = vld [vmem:[#allocation2] ss:$8 sps:$4 sm:$0xff]   ;;  %v2089_v9 = vld [vmem:[#allocation2 + $0x14] ss:$8 sps:$4 sm:$0xff]  }
  0xaa   : > { %s513_s20 = scalar_select %p512_p10, %s2490_s29, 1  ;;  %v2091_v10 = vld [vmem:[#allocation2 + $0x10] ss:$8 sps:$4 sm:$0xff]   ;;  %572 = vmatprep.subr.bf16.mxu1 %v2086_v6  ;;  %v2380_v27 = vmov 0.0   ;;  %v2677_v29 = vshrl.u32 %v558_v28, 7  ;;  %v2093_v32 = vld [vmem:[%s2952_s5 + $0x8] sm:$0xff]  }
  0xab   : > { %573 = vmatpush1.bf16.msra.mxu1 %v2088_v7  ;;  %1886 = vmatprep.subr.bf16.mxu0 %v2380_v27  ;;  %v2682_v31 = vld [vmem:[#allocation5] sm:$0x3]  ;;  %vm2381_vm1 = vmmov 0   ;;  %s2382_s17 = smov 96   ;;  %v1771_v58 = vld [vmem:[#allocation7] ss:$0 sm:$0xff] }
  0xac   : > { %s1811_s30 = sshll.u32 %s513_s20, 4  ;;  %s519_s16 = scalar_lea.vmem %s2948_s1, %s513_s20  ;;  %574 = vmatprep.subr.bf16.mxu1 %v2089_v9  ;;  %v2680_v30 = vsub.s32 0, %v2677_v29  ;;  %1888 = vmatprep.mubr.msk.bf16.mxu0 %vm2381_vm1, %v2380_v27  ;;  %vm733_vm2 = vcmask 64512   ;;  %vm781_vm3 = vcmask 130048   ;;  %vm1258_vm4 = vcmask 195584  }
  0xad   : > { %s516_s28 = scalar_lea.vmem %s2947_s0, %s1811_s30  ;;  %v523_v2 = vld [vmem:[%s519_s16] sm:$0x1]  ;;  %s2383_s19 = smov 80  }
  0xae   : > { %v2658_v1 = vld [vmem:[%s516_s28] sm:$0xff]  ;;  %v2660_v3 = vld [vmem:[%s516_s28 + $0x8] sm:$0xff]  ;;  %v1765_v4 = vmul.f32 -1.442695, %v523_v2  ;;  %v561_v33 = vrot.slane %v2682_v31, %v2680_v30  ;;  %s2384_s15 = smov 72   ;;  %s2385_s27 = smov 88  }
  0xaf   : > { %v613_v5 = vsel %vm568_vm0, %v2658_v1, 0.0  ;;  %v616_v8 = vsel %vm568_vm0, %v2660_v3, 0.0  ;;  %575 = vmatpush1.bf16.msra.mxu1 %v2091_v10  ;;  %s2386_s25 = smov 120   ;;  %s2387_s22 = smov 112  }
  0xb0   : > { %614 = vadd.xlane.f32.xlu0 %v613_v5  ;;  %2106 = vpow2.f32 %v1765_v4  ;;  %1866 = vmatprep.subr.bf16.mxu1 %v2380_v27  ;;  %s2388_s14 = smov 104   ;;  %s2389_s26 = smov 56  }
  0xb1   : > { %s2390_s18 = smov 48   ;;  %s2391_s4 = smov 64  }
  0xb2   : > { %s2392_s13 = smov 40   ;;  %s2999_s7 = sld [smem:[#allocation17_spill]] }
  0xb3   : > { %s2397_s30 = smov [#allocation11]  }
  0xb4   : > { %617 = vadd.xlane.f32.xlu0 %v616_v8  ;;  %s2298_s23 = sshll.u32 %s2397_s30, 4  ;;  %s2299_s23 = int_to_ptr.vmem [resolvable:$false] %s2298_s23 }
  0xb5   : > { %s2300_s21 = scalar_lea.vmem %s2299_s23, 512 }
  0xb8   : > { %s509_s28 = sand.u32 1, %s2999_s7  }
  0xb9   : > { %s2905_s20 = scalar_lea.sflag [#allocation4], %s509_s28 }
  0xba   : > { %v2107_v11 = vpop.eup %2106 }
  0xbb   : > { %v527_v12 = vadd.f32 1.0, %v2107_v11 }
  0xbd   : > { %2108 = vrcp.f32 %v527_v12 }
  0xc7   : > { %v2109_v13 = vpop.eup %2108 }
  0xc8   : > { %v530_v14 = vmul.f32 %v2109_v13, %v523_v2 }
  0xca   : > { %v531_v15 = vpack.c.bf16 %v530_v14, %v530_v14 }
  0xcc   : > { %1770 = vmatmul.mubr.msk.bf16.vlgmr.msra.gmra.mrb[0].mxu1 %vm568_vm0, %v531_v15  ;;  %v1814_v15 = vld [vmem:[%s2949_s2] sm:$0xff]  }
  0xcd   : > { %1867 = vmatpush3.bf16.msra.mxu1 %v2092_v26  ;;  %1870 = vmatprep.mubr.msk.bf16.mxu1 %vm2381_vm1, %v2380_v27 }
  0xce   : > { %1868 = vmatprep.subr.bf16.mxu1 %v2380_v27 }
  0xd1   : > { %1869 = vmatpush3.bf16.msra.mxu1 %v2093_v32 }
  0xd2   : > { %1874 = vmatprep.subr.bf16.mxu1 %v2380_v27 }
 0x13d   : > { %v615_v16 = vpop.xlane.xlu0 %614 }
 0x13e   : > { %v620_v17 = vmul.f32 0.03125, %v615_v16  ;;  %v1815_v16 = vunpack.c.l.bf16 %v1814_v15 }
 0x140   : > { %v622_v18 = vsub.f32 %v2658_v1, %v620_v17  ;;  %v1829_v17 = vld [vmem:[%s2949_s2 + $0x8] sm:$0xff]  }
 0x141   : > { %v618_v19 = vpop.xlane.xlu0 %617  ;;  %v1820_v28 = vunpack.c.h.bf16 %v1829_v17 }
 0x142   : > { %v621_v20 = vmul.f32 0.03125, %v618_v19  ;;  %v624_v21 = vmul.f32 %v622_v18, %v622_v18 }
 0x144   : > { %v623_v22 = vsub.f32 %v2660_v3, %v621_v20  ;;  %v626_v23 = vsel %vm568_vm0, %v624_v21, 0.0 }
 0x145   : > { %627 = vadd.xlane.f32.xlu1 %v626_v23 }
 0x146   : > { %v625_v24 = vmul.f32 %v623_v22, %v623_v22 }
 0x148   : > { %v629_v25 = vsel %vm568_vm0, %v625_v24, 0.0 }
 0x149   : > { %630 = vadd.xlane.f32.xlu1 %v629_v25 }
 0x19f   : > { %v606_v34 = vpop.f32.mrb[0].mxu1 }
 0x1a0   : > { %v607_v35 = vadd.f32 %v606_v34, %v561_v33  ;;  %v2694_v36 = vpop.f32.mrb[1].mxu1 }
 0x1a1   : > { %v610_v37 = vpop.f32.mrb[2].mxu1 }
 0x1a2   : > { %v640_v38 = vadd.f32 1.0, %v607_v35  ;;  %v611_v39 = vpop.f32.mrb[3].mxu1  ;;  %v2699_v52 = vrot.slane %v607_v35, %v2680_v30 }
 0x1a4   : > { %v644_v40 = vrot.slane %v640_v38, %v2680_v30  ;;  %v1830_v38 = vld [vmem:[%s2949_s2 + $0x10] sm:$0xff]  }
 0x1a6   : > { %646 = vrot.lane.b32.xlu0 %v644_v40, %s2382_s17 }
 0x1d2   : > { %v628_v41 = vpop.xlane.xlu1 %627 }
 0x1d3   : > { %v632_v43 = vmul.f32 0.03125, %v628_v41 }
 0x1d5   : > { %v634_v45 = vadd.f32 1e-06, %v632_v43 }
 0x1d6   : > { %v631_v42 = vpop.xlane.xlu1 %630 }
 0x1d7   : > { %v633_v44 = vmul.f32 0.03125, %v631_v42  ;;  %2110 = vrsqrt.f32 %v634_v45  ;;  %v1823_v42 = vunpack.c.l.bf16 %v1830_v38 }
 0x1d9   : > { %v635_v46 = vadd.f32 1e-06, %v633_v44  ;;  %v1824_v44 = vunpack.c.h.bf16 %v1830_v38 }
 0x1db   : > { %2112 = vrsqrt.f32 %v635_v46 }
 0x1e1   : > { %v2111_v47 = vpop.eup %2110 }
 0x1e2   : > { %v638_v49 = vmul.f32 %v2111_v47, %v622_v18  ;;  %v1816_v18 = vunpack.c.h.bf16 %v1814_v15 }
 0x1e5   : > { %v2113_v48 = vpop.eup %2112 }
 0x1e6   : > { %v639_v50 = vmul.f32 %v2113_v48, %v623_v22  ;;  %v1819_v22 = vunpack.c.l.bf16 %v1829_v17 }
 0x218   : > { %v647_v51 = vpop.permute.xlu0 %646 }
 0x219   : > { %v649_v53 = vmul.f32 %v647_v51, %v638_v49  ;;  %v650_v54 = vmul.f32 %v647_v51, %v639_v50  ;;  %v1831_v49 = vld [vmem:[%s2949_s2 + $0x18] sm:$0xff]  }
 0x21b   : > { %v655_v55 = vadd.f32 %v2699_v52, %v649_v53  ;;  %v656_v56 = vadd.f32 %v2699_v52, %v650_v54 }
 0x21d   : > { %v657_v57 = vpack.c.bf16 %v656_v56, %v655_v55  ;;  %v1827_v55 = vunpack.c.l.bf16 %v1831_v49  ;;  %v1828_v56 = vunpack.c.h.bf16 %v1831_v49 }
 0x21f   : > { %1871 = vmatmul.mubr.msk.bf16.vlgmr.msra.gmra.mrb[4].mxu1 %vm568_vm0, %v657_v57 }
 0x220   : > { %1876 = vmatprep.mubr.msk.bf16.mxu1 %vm2381_vm1, %v2380_v27 }
 0x2f2   : > { %v718_v59 = vpop.f32.mrb[4].mxu1 }
 0x2f3   : > { %v1872_v60 = vpop.f32.mrb[5].mxu1  ;;  %v719_v62 = vadd.f32 %v1771_v58, %v718_v59 }
 0x2f4   : > { %v721_v61 = vpop.f32.mrb[6].mxu1 }
 0x2f5   : > { %v722_v63 = vadd.f32 %v1771_v58, %v721_v61  ;;  %v1873_v0 = vpop.f32.mrb[7].mxu1 }
 0x2f7   : > { %v2706_v2 = vpack.c.bf16 %v722_v63, %v719_v62 }
 0x2f9   : > { %985 = vrot.lane.b32.xlu0 %v2706_v2, %s2383_s19  ;;  %731 = vrot.lane.b32.xlu1 %v2706_v2, %s2382_s17  ;;  %s2393_s19 = smov 8  }
 0x2fd   : > { %1111 = vrot.lane.b32.xlu0 %v2706_v2, %s2384_s15  ;;  %859 = vrot.lane.b32.xlu1 %v2706_v2, %s2385_s27  ;;  %s2394_s15 = smov 16   ;;  %s2395_s27 = smov 24  }
 0x301   : > { %857 = vrot.lane.b32.xlu1 %v2706_v2, %s2386_s25  ;;  %s2396_s25 = smov 32  }
 0x305   : > { %983 = vrot.lane.b32.xlu1 %v2706_v2, %s2387_s22 }
 0x309   : > { %1109 = vrot.lane.b32.xlu1 %v2706_v2, %s2388_s14 }
 0x36b   : > { %v732_v4 = vpop.permute.xlu1 %731  ;;  %v986_v8 = vpop.permute.xlu0 %985 }
 0x36c   : > { %v738_v5 = vsel %vm733_vm2, %v732_v4, 0  ;;  %v991_v10 = vsel %vm733_vm2, %v986_v8, 0 }
 0x36d   : > { %1875 = vmatpush3.bf16.xpose.msra.mxu1 %v738_v5 }
 0x36e   : > { %1880 = vmatprep.subr.bf16.mxu1 %v2380_v27 }
 0x36f   : > { %v860_v6 = vpop.permute.xlu1 %859  ;;  %v1112_v11 = vpop.permute.xlu0 %1111 }
 0x370   : > { %v865_v7 = vsel %vm733_vm2, %v860_v6, 0  ;;  %v1117_v13 = vsel %vm733_vm2, %v1112_v11, 0 }
 0x371   : > { %1887 = vmatpush3.bf16.xpose.msra.mxu0 %v865_v7 }
 0x372   : > { %1898 = vmatprep.subr.bf16.mxu0 %v2380_v27 }
 0x373   : > { %v858_v9 = vpop.permute.xlu1 %857 }
 0x374   : > { %1877 = vmatmul.mubr.msk.bf16.vlgmr.msra.gmra.mrb[8].mxu1 %vm733_vm2, %v2706_v2 }
 0x375   : > { %1882 = vmatprep.mubr.msk.bf16.mxu1 %vm2381_vm1, %v2380_v27 }
 0x377   : > { %v984_v12 = vpop.permute.xlu1 %983 }
 0x378   : > { %1889 = vmatmul.mubr.msk.bf16.vlgmr.msra.gmra.mrb[0].mxu0 %vm733_vm2, %v858_v9 }
 0x379   : > { %1899 = vmatpush3.bf16.xpose.msra.mxu0 %v991_v10  ;;  %1900 = vmatprep.mubr.msk.bf16.mxu0 %vm2381_vm1, %v2380_v27 }
 0x37a   : > { %1910 = vmatprep.subr.bf16.mxu0 %v2380_v27 }
 0x37b   : > { %v1110_v14 = vpop.permute.xlu1 %1109 }
 0x380   : > { %1901 = vmatmul.mubr.msk.bf16.vlgmr.msra.gmra.mrb[4].mxu0 %vm733_vm2, %v984_v12 }
 0x381   : > { %1911 = vmatpush3.bf16.xpose.msra.mxu0 %v1117_v13  ;;  %1912 = vmatprep.mubr.msk.bf16.mxu0 %vm2381_vm1, %v2380_v27 }
 0x382   : > { %1922 = vmatprep.subr.bf16.mxu0 %v2380_v27 }
 0x388   : > { %1913 = vmatmul.mubr.msk.bf16.vlgmr.msra.gmra.mrb[8].mxu0 %vm733_vm2, %v1110_v14 }
 0x389   : > { %1926 = vmatprep.mubr.msk.bf16.mxu0 %vm2381_vm1, %v2380_v27 }
 0x447   : > { %v774_v19 = vpop.f32.mrb[8].mxu1 }
 0x448   : > { %v775_v20 = vadd.f32 %v1815_v16, %v774_v19  ;;  %v1878_v21 = vpop.f32.mrb[9].mxu1 }
 0x449   : > { %v777_v23 = vpop.f32.mrb[10].mxu1 }
 0x44a   : > { %v778_v24 = vadd.f32 %v1816_v18, %v777_v23  ;;  %v1879_v25 = vpop.f32.mrb[11].mxu1  ;;  %v782_v26 = vsel %vm781_vm3, %v775_v20, -inf }
 0x44b   : > { %v901_v32 = vpop.f32.mrb[0].mxu0  ;;  %783 = vmax.xlane.f32.xlu0 %v782_v26 }
 0x44c   : > { %v902_v33 = vadd.f32 %v1819_v22, %v901_v32  ;;  %v1890_v34 = vpop.f32.mrb[1].mxu0  ;;  %v785_v35 = vsel %vm781_vm3, %v778_v24, -inf }
 0x44d   : > { %v904_v37 = vpop.f32.mrb[2].mxu0  ;;  %786 = vmax.xlane.f32.xlu1 %v785_v35 }
 0x44e   : > { %v905_v39 = vadd.f32 %v1820_v28, %v904_v37  ;;  %v1891_v40 = vpop.f32.mrb[3].mxu0  ;;  %v908_v41 = vsel %vm781_vm3, %v902_v33, -inf }
 0x44f   : > { %909 = vmax.xlane.f32.xlu0 %v908_v41 }
 0x450   : > { %v911_v43 = vsel %vm781_vm3, %v905_v39, -inf }
 0x453   : > { %v1027_v45 = vpop.f32.mrb[4].mxu0  ;;  %912 = vmax.xlane.f32.xlu0 %v911_v43 }
 0x454   : > { %v1028_v46 = vadd.f32 %v1823_v42, %v1027_v45  ;;  %v1902_v47 = vpop.f32.mrb[5].mxu0 }
 0x455   : > { %v1030_v48 = vpop.f32.mrb[6].mxu0 }
 0x456   : > { %v1031_v50 = vadd.f32 %v1824_v44, %v1030_v48  ;;  %v1903_v51 = vpop.f32.mrb[7].mxu0  ;;  %v1034_v53 = vsel %vm781_vm3, %v1028_v46, -inf }
 0x457   : > { %1035 = vmax.xlane.f32.xlu0 %v1034_v53 }
 0x458   : > { %v1037_v54 = vsel %vm781_vm3, %v1031_v50, -inf }
 0x459   : > { %1038 = vmax.xlane.f32.xlu1 %v1037_v54 }
 0x45b   : > { %v1153_v57 = vpop.f32.mrb[8].mxu0 }
 0x45c   : > { %v1154_v58 = vadd.f32 %v1827_v55, %v1153_v57  ;;  %v1914_v59 = vpop.f32.mrb[9].mxu0 }
 0x45d   : > { %v1156_v60 = vpop.f32.mrb[10].mxu0 }
 0x45e   : > { %v2755_v61 = vadd.f32 %v1828_v56, %v1156_v60  ;;  %v1915_v62 = vpop.f32.mrb[11].mxu0  ;;  %v1160_v63 = vsel %vm781_vm3, %v1154_v58, -inf }
 0x45f   : > { %1161 = vmax.xlane.f32.xlu0 %v1160_v63 }
 0x460   : > { %v1163_v0 = vsel %vm781_vm3, %v2755_v61, -inf }
 0x461   : > { %1164 = vmax.xlane.f32.xlu1 %v1163_v0 }
 0x4d8   : > { %v784_v4 = vpop.xlane.xlu0 %783 }
 0x4d9   : > { %v788_v5 = vsub.f32 %v775_v20, %v784_v4 }
 0x4da   : > { %v787_v6 = vpop.xlane.xlu1 %786 }
 0x4db   : > { %v790_v7 = vmul.f32 1.442695, %v788_v5  ;;  %v789_v8 = vsub.f32 %v778_v24, %v787_v6 }
 0x4dc   : > { %v910_v9 = vpop.xlane.xlu0 %909 }
 0x4dd   : > { %2114 = vpow2.f32 %v790_v7  ;;  %v792_v10 = vmul.f32 1.442695, %v789_v8  ;;  %v914_v11 = vsub.f32 %v902_v33, %v910_v9 }
 0x4df   : > { %2116 = vpow2.f32 %v792_v10  ;;  %v916_v12 = vmul.f32 1.442695, %v914_v11 }
 0x4e0   : > { %v913_v13 = vpop.xlane.xlu0 %912 }
 0x4e1   : > { %2118 = vpow2.f32 %v916_v12  ;;  %v915_v14 = vsub.f32 %v905_v39, %v913_v13 }
 0x4e3   : > { %v918_v15 = vmul.f32 1.442695, %v915_v14 }
 0x4e4   : > { %v1036_v16 = vpop.xlane.xlu0 %1035 }
 0x4e5   : > { %2120 = vpow2.f32 %v918_v15  ;;  %v1040_v17 = vsub.f32 %v1028_v46, %v1036_v16 }
 0x4e6   : > { %v1039_v18 = vpop.xlane.xlu1 %1038 }
 0x4e7   : > { %v2115_v19 = vpop.eup %2114  ;;  %v1042_v21 = vmul.f32 1.442695, %v1040_v17  ;;  %v1041_v20 = vsub.f32 %v1031_v50, %v1039_v18 }
 0x4e8   : > { %v794_v22 = vsel %vm781_vm3, %v2115_v19, 0.0 }
 0x4e9   : > { %v2117_v23 = vpop.eup %2116  ;;  %2122 = vpow2.f32 %v1042_v21  ;;  %v1044_v24 = vmul.f32 1.442695, %v1041_v20  ;;  %795 = vadd.xlane.f32.xlu0 %v794_v22 }
 0x4ea   : > { %v797_v25 = vsel %vm781_vm3, %v2117_v23, 0.0 }
 0x4eb   : > { %v2762_v26 = vpop.eup %2118  ;;  %2124 = vpow2.f32 %v1044_v24  ;;  %798 = vadd.xlane.f32.xlu1 %v797_v25 }
 0x4ec   : > { %v1162_v28 = vpop.xlane.xlu0 %1161  ;;  %v920_v32 = vsel %vm781_vm3, %v2762_v26, 0.0 }
 0x4ed   : > { %v1166_v33 = vsub.f32 %v1154_v58, %v1162_v28  ;;  %921 = vadd.xlane.f32.xlu0 %v920_v32  ;;  %v2094_v28 = vld [vmem:[#allocation8] sm:$0xff]  }
 0x4ee   : > { %v1165_v44 = vpop.xlane.xlu1 %1164  ;;  %1923 = vmatpush3.bf16.msra.mxu0 %v2094_v28 }
 0x4ef   : > { %v2121_v34 = vpop.eup %2120  ;;  %v1168_v35 = vmul.f32 1.442695, %v1166_v33  ;;  %v1167_v45 = vsub.f32 %v2755_v61, %v1165_v44  ;;  %1924 = vmatprep.subr.bf16.mxu0 %v2380_v27 }
 0x4f0   : > { %v923_v37 = vsel %vm781_vm3, %v2121_v34, 0.0 }
 0x4f1   : > { %2126 = vpow2.f32 %v1168_v35  ;;  %924 = vadd.xlane.f32.xlu1 %v923_v37  ;;  %v1170_v46 = vmul.f32 1.442695, %v1167_v45 }
 0x4f3   : > { %v2767_v38 = vpop.eup %2122  ;;  %2128 = vpow2.f32 %v1170_v46 }
 0x4f4   : > { %v1046_v39 = vsel %vm781_vm3, %v2767_v38, 0.0 }
 0x4f5   : > { %v2125_v40 = vpop.eup %2124  ;;  %1047 = vadd.xlane.f32.xlu0 %v1046_v39 }
 0x4f6   : > { %v1049_v41 = vsel %vm781_vm3, %v2125_v40, 0.0 }
 0x4f7   : > { %1050 = vadd.xlane.f32.xlu1 %v1049_v41 }
 0x4fb   : > { %v2772_v42 = vpop.eup %2126 }
 0x4fc   : > { %v1172_v43 = vsel %vm781_vm3, %v2772_v42, 0.0 }
 0x4fd   : > { %1173 = vadd.xlane.f32.xlu0 %v1172_v43  ;;  %v2129_v47 = vpop.eup %2128 }
 0x4fe   : > { %v1175_v48 = vsel %vm781_vm3, %v2129_v47, 0.0 }
 0x508   : > { %931 = vrot.lane.b32.xlu1 %v2706_v2, %s2389_s26  ;;  %s3000_s26 = sld [smem:[#allocation22_spill]] }
 0x50c   : > { %1057 = vrot.lane.b32.xlu1 %v2706_v2, %s2390_s18  ;;  %s1762_s18 = sshll.u32 %s509_s28, 4 }
 0x50e   : > { %p3003_p3 = scmp.ne.s32.totalorder %s3000_s26, 0 }
 0x513   : > { %805 = vrot.lane.b32.xlu0 %v2706_v2, %s2391_s4 }
 0x530   : > { %1176 = vadd.xlane.f32.xlu1 %v1175_v48 }
 0x541   : > { %1183 = vrot.lane.b32.xlu1 %v2706_v2, %s2392_s13 }
 0x576   : > { %v796_v49 = vpop.xlane.xlu0 %795 }
 0x578   : > { %v799_v50 = vpop.xlane.xlu1 %798 }
 0x579   : > { %2130 = vrcp.f32 %v799_v50 }
 0x57a   : > { %2132 = vrcp.f32 %v796_v49  ;;  %v922_v51 = vpop.xlane.xlu0 %921 }
 0x57e   : > { %v925_v53 = vpop.xlane.xlu1 %924 }
 0x57f   : > { %2134 = vrcp.f32 %v925_v53 }
 0x580   : > { %2136 = vrcp.f32 %v922_v51 }
 0x582   : > { %v1048_v54 = vpop.xlane.xlu0 %1047 }
 0x583   : > { %v2131_v55 = vpop.eup %2130 }
 0x584   : > { %v2133_v57 = vpop.eup %2132  ;;  %v803_v58 = vmul.f32 %v2131_v55, %v2117_v23  ;;  %v1051_v59 = vpop.xlane.xlu1 %1050 }
 0x585   : > { %v802_v60 = vmul.f32 %v2133_v57, %v2115_v19  ;;  %2138 = vrcp.f32 %v1051_v59 }
 0x586   : > { %2140 = vrcp.f32 %v1048_v54 }
 0x587   : > { %v804_v62 = vpack.c.bf16 %v803_v58, %v802_v60 }
 0x588   : > { %v932_v63 = vpop.permute.xlu1 %931 }
 0x589   : > { %v2135_v2 = vpop.eup %2134 }
 0x58a   : > { %v1174_v56 = vpop.xlane.xlu0 %1173  ;;  %v2137_v0 = vpop.eup %2136  ;;  %v929_v4 = vmul.f32 %v2135_v2, %v2121_v34  ;;  %v1789_v2 = vld [vmem:[#allocation10] ss:$0 sm:$0xff] }
 0x58b   : > { %v928_v5 = vmul.f32 %v2137_v0, %v2762_v26  ;;  %2142 = vrcp.f32 %v1174_v56 }
 0x58c   : > { %v1058_v8 = vpop.permute.xlu1 %1057 }
 0x58d   : > { %v930_v6 = vpack.c.bf16 %v929_v4, %v928_v5 }
 0x58e   : > { %v806_v61 = vpop.permute.xlu0 %805 }
 0x58f   : > { %1881 = vmatpush3.bf16.msra.mxu1 %v806_v61  ;;  %v2139_v7 = vpop.eup %2138 }
 0x590   : > { %1892 = vmatprep.subr.bf16.mxu1 %v2380_v27  ;;  %v2141_v9 = vpop.eup %2140  ;;  %v1055_v10 = vmul.f32 %v2139_v7, %v2125_v40  ;;  %v2095_v40 = vld [vmem:[#allocation8 + $0x8] sm:$0xff]  }
 0x591   : > { %v1054_v11 = vmul.f32 %v2141_v9, %v2767_v38  ;;  %1925 = vmatpush3.bf16.msra.mxu0 %v2095_v40 }
 0x592   : > { %1883 = vmatmul.mubr.msk.bf16.vlgmr.msra.gmra.mrb[12].mxu1 %vm781_vm3, %v804_v62  ;;  %1938 = vmatprep.subr.bf16.mxu0 %v2380_v27 }
 0x593   : > { %1893 = vmatpush3.bf16.msra.mxu1 %v932_v63  ;;  %1894 = vmatprep.mubr.msk.bf16.mxu1 %vm2381_vm1, %v2380_v27  ;;  %v1056_v12 = vpack.c.bf16 %v1055_v10, %v1054_v11 }
 0x594   : > { %1904 = vmatprep.subr.bf16.mxu1 %v2380_v27 }
 0x595   : > { %v2143_v15 = vpop.eup %2142 }
 0x596   : > { %v1180_v17 = vmul.f32 %v2143_v15, %v2772_v42 }
 0x59a   : > { %1895 = vmatmul.mubr.msk.bf16.vlgmr.msra.gmra.mrb[16].mxu1 %vm781_vm3, %v930_v6 }
 0x59b   : > { %1905 = vmatpush3.bf16.msra.mxu1 %v1058_v8  ;;  %1906 = vmatprep.mubr.msk.bf16.mxu1 %vm2381_vm1, %v2380_v27 }
 0x59c   : > { %1916 = vmatprep.subr.bf16.mxu1 %v2380_v27 }
 0x5a2   : > { %1907 = vmatmul.mubr.msk.bf16.vlgmr.msra.gmra.mrb[20].mxu1 %vm781_vm3, %v1056_v12 }
 0x5a3   : > { %1918 = vmatprep.mubr.msk.bf16.mxu1 %vm2381_vm1, %v2380_v27 }
 0x5bd   : > { %v1177_v13 = vpop.xlane.xlu1 %1176 }
 0x5be   : > { %2144 = vrcp.f32 %v1177_v13 }
 0x5c1   : > { %v1184_v14 = vpop.permute.xlu1 %1183 }
 0x5c2   : > { %1917 = vmatpush3.bf16.msra.mxu1 %v1184_v14 }
 0x5c3   : > { %1930 = vmatprep.subr.bf16.mxu1 %v2380_v27 }
 0x5c8   : > { %v2145_v16 = vpop.eup %2144 }
 0x5c9   : > { %v1181_v18 = vmul.f32 %v2145_v16, %v2129_v47 }
 0x5cb   : > { %v1182_v19 = vpack.c.bf16 %v1181_v18, %v1180_v17 }
 0x5cd   : > { %1919 = vmatmul.mubr.msk.bf16.vlgmr.msra.gmra.mrb[24].mxu1 %vm781_vm3, %v1182_v19 }
 0x5ce   : > { %1934 = vmatprep.mubr.msk.bf16.mxu1 %vm2381_vm1, %v2380_v27 }
 0x665   : > { %v845_v21 = vpop.f32.mrb[12].mxu1 }
 0x666   : > { %v1884_v20 = vpop.f32.mrb[13].mxu1 }
 0x667   : > { %v848_v22 = vpop.f32.mrb[14].mxu1 }
 0x668   : > { %v1885_v23 = vpop.f32.mrb[15].mxu1 }
 0x66d   : > { %v971_v24 = vpop.f32.mrb[16].mxu1 }
 0x66e   : > { %v1896_v25 = vpop.f32.mrb[17].mxu1 }
 0x66f   : > { %v974_v26 = vpop.f32.mrb[18].mxu1 }
 0x670   : > { %v2071_v32 = vpack.i.bf16 %v974_v26, %v971_v24  ;;  %v1897_v33 = vpop.f32.mrb[19].mxu1  ;;  %v2097_v26 = vld [vmem:[%s2956_s9 + $0x8] sm:$0xff]  }
 0x671   : > { %v564_v33 = vsub.s32 1, %v2677_v29 }
 0x672   : > { %2072 = vrot.lane.b32.xlu0 %v2071_v32, %s2393_s19 }
 0x675   : > { %v1097_v34 = vpop.f32.mrb[20].mxu1 }
 0x676   : > { %v1908_v35 = vpop.f32.mrb[21].mxu1 }
 0x677   : > { %v1100_v37 = vpop.f32.mrb[22].mxu1 }
 0x678   : > { %v2076_v38 = vpack.i.bf16 %v1100_v37, %v1097_v34  ;;  %v1909_v39 = vpop.f32.mrb[23].mxu1 }
 0x67a   : > { %2077 = vrot.lane.b32.xlu1 %v2076_v38, %s2394_s15  ;;  %v565_v38 = vrot.slane %v2682_v31, %v564_v33  ;;  %v2098_v31 = vld [vmem:[%s2958_s11] sm:$0xff]  }
 0x67c   : > { %v2844_v40 = vadd.f32 %v2694_v36, %v565_v38  ;;  %v2099_v36 = vld [vmem:[%s2958_s11 + $0x8] sm:$0xff]  }
 0x6a0   : > { %v1223_v41 = vpop.f32.mrb[24].mxu1 }
 0x6a1   : > { %v1920_v42 = vpop.f32.mrb[25].mxu1 }
 0x6a2   : > { %v1226_v43 = vpop.f32.mrb[26].mxu1 }
 0x6a3   : > { %v2081_v44 = vpack.i.bf16 %v1226_v43, %v1223_v41  ;;  %v1921_v45 = vpop.f32.mrb[27].mxu1  ;;  %v1375_v41 = vadd.f32 1.0, %v2844_v40 }
 0x6a5   : > { %2082 = vrot.lane.b32.xlu0 %v2081_v44, %s2395_s27  ;;  %v1379_v44 = vrot.slane %v1375_v41, %v2680_v30  ;;  %s3001_s27 = sld [smem:[#allocation26_spill]] }
 0x6ab   : > { %s3002_s22 = smov %s3001_s27 }
 0x6e4   : > { %v2073_v46 = vpop.permute.xlu0 %2072 }
 0x6e5   : > { %v2075_v48 = vunpack.i.h.bf16 %v2073_v46  ;;  %v2074_v49 = vunpack.i.l.bf16 %v2073_v46 }
 0x6e7   : > { %v1255_v54 = vsel %vm733_vm2, %v848_v22, %v2075_v48  ;;  %v1254_v55 = vsel %vm733_vm2, %v845_v21, %v2074_v49 }
 0x6ec   : > { %v2078_v47 = vpop.permute.xlu1 %2077 }
 0x6ed   : > { %v2080_v50 = vunpack.i.h.bf16 %v2078_v47  ;;  %v2079_v51 = vunpack.i.l.bf16 %v2078_v47 }
 0x6ef   : > { %v1257_v58 = vsel %vm781_vm3, %v1255_v54, %v2080_v50  ;;  %v1256_v59 = vsel %vm781_vm3, %v1254_v55, %v2079_v51  ;;  %v2101_v54 = vld [vmem:[%s2958_s11 + $0x18] sm:$0xff]   ;;  %v2102_v55 = vld [vmem:[%s2958_s11 + $0x20] sm:$0xff]  }
 0x717   : > { %v2083_v53 = vpop.permute.xlu0 %2082 }
 0x718   : > { %v2085_v56 = vunpack.i.h.bf16 %v2083_v53  ;;  %v2084_v57 = vunpack.i.l.bf16 %v2083_v53  ;;  %v2100_v53 = vld [vmem:[%s2958_s11 + $0x10] sm:$0xff]  }
 0x71a   : > { %v1260_v60 = vsel %vm1258_vm4, %v1257_v58, %v2085_v56  ;;  %v1259_v61 = vsel %vm1258_vm4, %v1256_v59, %v2084_v57  ;;  %v2103_v56 = vld [vmem:[%s2958_s11 + $0x28] sm:$0xff]   ;;  %v2104_v57 = vld [vmem:[%s2958_s11 + $0x30] sm:$0xff]   ;;  %v2105_v58 = vld [vmem:[%s2958_s11 + $0x38] sm:$0xff]  }
 0x71b   : > { %v1261_v62 = vpack.c.bf16 %v1260_v60, %v1259_v61  ;;  %v1793_v59 = vld [vmem:[%s2957_s10] ss:$0 sm:$0xff] }
 0x71d   : > { %1927 = vmatmul.mubr.msk.bf16.vlgmr.msra.gmra.mrb[12].mxu0 %vm568_vm0, %v1261_v62 }
 0x71e   : > { %1954 = vmatprep.mubr.msk.bf16.mxu0 %vm2381_vm1, %v2380_v27  ;;  %1939 = vmatpush3.bf16.msra.mxu0 %v2098_v31 }
 0x71f   : > { %1940 = vmatprep.subr.bf16.mxu0 %v2380_v27 }
 0x722   : > { %1941 = vmatpush3.bf16.msra.mxu0 %v2099_v36 }
 0x723   : > { %1942 = vmatprep.subr.bf16.mxu0 %v2380_v27 }
 0x726   : > { %1943 = vmatpush3.bf16.msra.mxu0 %v2100_v53 }
 0x727   : > { %1944 = vmatprep.subr.bf16.mxu0 %v2380_v27 }
 0x72a   : > { %1945 = vmatpush3.bf16.msra.mxu0 %v2101_v54 }
 0x72b   : > { %1946 = vmatprep.subr.bf16.mxu0 %v2380_v27 }
 0x72e   : > { %1947 = vmatpush3.bf16.msra.mxu0 %v2102_v55 }
 0x72f   : > { %1948 = vmatprep.subr.bf16.mxu0 %v2380_v27 }
 0x732   : > { %1949 = vmatpush3.bf16.msra.mxu0 %v2103_v56 }
 0x733   : > { %1950 = vmatprep.subr.bf16.mxu0 %v2380_v27 }
 0x736   : > { %1951 = vmatpush3.bf16.msra.mxu0 %v2104_v57 }
 0x737   : > { %1952 = vmatprep.subr.bf16.mxu0 %v2380_v27 }
 0x73a   : > { %1953 = vmatpush3.bf16.msra.mxu0 %v2105_v58 }
 0x7f0   : > { %v1322_v63 = vpop.f32.mrb[12].mxu0 }
 0x7f1   : > { %v1323_v0 = vadd.f32 %v1789_v2, %v1322_v63  ;;  %v1928_v4 = vpop.f32.mrb[13].mxu0 }
 0x7f2   : > { %v1325_v5 = vpop.f32.mrb[14].mxu0 }
 0x7f3   : > { %v1326_v6 = vadd.f32 %v1789_v2, %v1325_v5  ;;  %1331 = vrot.lane.b32.xlu1 %v1323_v0, %s2391_s4  ;;  %v1929_v7 = vpop.f32.mrb[15].mxu0 }
 0x7f5   : > { %1333 = vrot.lane.b32.xlu0 %v1326_v6, %s2391_s4 }
 0x865   : > { %v1332_v8 = vpop.permute.xlu1 %1331 }
 0x866   : > { %v1337_v9 = vmul.f32 %v1332_v8, %v2699_v52 }
 0x867   : > { %v1334_v10 = vpop.permute.xlu0 %1333 }
 0x868   : > { %v1338_v11 = vmul.f32 %v1334_v10, %v2699_v52  ;;  %1341 = vrot.lane.b32.xlu1 %v1337_v9, %s2391_s4 }
 0x86a   : > { %1343 = vrot.lane.b32.xlu0 %v1338_v11, %s2391_s4  ;;  %s511_s4 = scalar_lea.vmem [#allocation11], %s1762_s18 }
 0x86b   : > { %s1627_s13 = sshll.u32 %s511_s4, 4  ;;  %s2896_s13 = int_to_ptr.vmem [resolvable:$true] %s1627_s13 }
 0x86c   : > { %p2301_p8 = scmp.lt.s32.totalorder %s2896_s13, %s2299_s23 }
 0x8da   : > { %v1342_v12 = vpop.permute.xlu1 %1341 }
 0x8db   : > { %v2819_v13 = vadd.f32 %v1342_v12, %v2658_v1 }
 0x8dc   : > { %v1344_v14 = vpop.permute.xlu0 %1343 }
 0x8dd   : > { %v2822_v15 = vadd.f32 %v1344_v14, %v2660_v3  ;;  %v1349_v16 = vsel %vm568_vm0, %v2819_v13, 0.0 }
 0x8de   : > { %1350 = vadd.xlane.f32.xlu1 %v1349_v16 }
 0x8df   : > { %v1352_v17 = vsel %vm568_vm0, %v2822_v15, 0.0 }
 0x8e0   : > { %1353 = vadd.xlane.f32.xlu0 %v1352_v17 }
 0x8ef   : > { %1383 = vrot.lane.b32.xlu1 %v2699_v52, %s2396_s25  ;;  %v2096_v52 = vld [vmem:[%s2956_s9] sm:$0xff]  }
 0x8f0   : > { %1931 = vmatpush3.bf16.msra.mxu1 %v2096_v52 }
 0x8f1   : > { %1932 = vmatprep.subr.bf16.mxu1 %v2380_v27 }
 0x8f4   : > { %1933 = vmatpush3.bf16.msra.mxu1 %v2097_v26 }
 0x96b   : > { %v1351_v18 = vpop.xlane.xlu1 %1350 }
 0x96c   : > { %v1355_v19 = vmul.f32 0.03125, %v1351_v18 }
 0x96d   : > { %v1354_v1 = vpop.xlane.xlu0 %1353 }
 0x96e   : > { %v1357_v21 = vsub.f32 %v2819_v13, %v1355_v19  ;;  %v1356_v20 = vmul.f32 0.03125, %v1354_v1 }
 0x96f   : > { %v1384_v48 = vpop.permute.xlu1 %1383 }
 0x970   : > { %v1358_v3 = vsub.f32 %v2822_v15, %v1356_v20  ;;  %v1359_v22 = vmul.f32 %v1357_v21, %v1357_v21 }
 0x972   : > { %v1361_v23 = vsel %vm568_vm0, %v1359_v22, 0.0  ;;  %v1360_v24 = vmul.f32 %v1358_v3, %v1358_v3  ;;  %v1797_v22 = vld [vmem:[%s2959_s12] ss:$0 sm:$0xff] }
 0x973   : > { %1362 = vadd.xlane.f32.xlu0 %v1361_v23 }
 0x974   : > { %v1364_v25 = vsel %vm568_vm0, %v1360_v24, 0.0 }
 0x977   : > { %1365 = vadd.xlane.f32.xlu0 %v1364_v25 }
 0xa00   : > { %v1363_v28 = vpop.xlane.xlu0 %1362 }
 0xa01   : > { %v1367_v32 = vmul.f32 0.03125, %v1363_v28 }
 0xa03   : > { %v1369_v34 = vadd.f32 1e-06, %v1367_v32  ;;  %v1590_v32 = vrot.slane %v2844_v40, %v2680_v30 }
 0xa04   : > { %v1366_v35 = vpop.xlane.xlu0 %1365 }
 0xa05   : > { %2146 = vrsqrt.f32 %v1369_v34  ;;  %v1368_v37 = vmul.f32 0.03125, %v1366_v35 }
 0xa07   : > { %v1370_v39 = vadd.f32 1e-06, %v1368_v37 }
 0xa09   : > { %2148 = vrsqrt.f32 %v1370_v39 }
 0xa0f   : > { %v2147_v42 = vpop.eup %2146 }
 0xa10   : > { %v1373_v43 = vmul.f32 %v2147_v42, %v1357_v21 }
 0xa12   : > { %v1380_v46 = vmul.f32 %v1379_v44, %v1373_v43 }
 0xa13   : > { %v2149_v45 = vpop.eup %2148 }
 0xa14   : > { %v1374_v29 = vmul.f32 %v2149_v45, %v1358_v3  ;;  %v1386_v49 = vadd.f32 %v1384_v48, %v1380_v46 }
 0xa16   : > { %v1381_v47 = vmul.f32 %v1379_v44, %v1374_v29 }
 0xa18   : > { %v1387_v50 = vadd.f32 %v1384_v48, %v1381_v47 }
 0xa1a   : > { %v1388_v51 = vpack.c.bf16 %v1387_v50, %v1386_v49 }
 0xa1c   : > { %1935 = vmatmul.mubr.msk.bf16.vlgmr.msra.gmra.mrb[28].mxu1 %vm568_vm0, %v1388_v51 }
 0xaef   : > { %v1449_v60 = vpop.f32.mrb[28].mxu1 }
 0xaf0   : > { %v1450_v61 = vadd.f32 %v1793_v59, %v1449_v60  ;;  %v1936_v62 = vpop.f32.mrb[29].mxu1 }
 0xaf1   : > { %v1452_v2 = vpop.f32.mrb[30].mxu1 }
 0xaf2   : > { %v1458_v63 = vmul.f32 0.044715, %v1450_v61  ;;  %v1453_v0 = vadd.f32 %v1793_v59, %v1452_v2  ;;  %v1937_v4 = vpop.f32.mrb[31].mxu1  ;;  %v1456_v18 = vmul.f32 0.5, %v1450_v61 }
 0xaf4   : > { %v1460_v5 = vmul.f32 %v1458_v63, %v1450_v61  ;;  %v1459_v6 = vmul.f32 0.044715, %v1453_v0  ;;  %v1457_v19 = vmul.f32 0.5, %v1453_v0 }
 0xaf6   : > { %v1462_v7 = vmul.f32 %v1460_v5, %v1450_v61  ;;  %v1461_v8 = vmul.f32 %v1459_v6, %v1453_v0 }
 0xaf8   : > { %v1464_v9 = vadd.f32 %v1462_v7, %v1450_v61  ;;  %v1463_v10 = vmul.f32 %v1461_v8, %v1453_v0 }
 0xafa   : > { %v1466_v11 = vmul.f32 0.7978846, %v1464_v9  ;;  %v1465_v27 = vadd.f32 %v1463_v10, %v1453_v0 }
 0xafc   : > { %2150 = vtanh.f32 %v1466_v11  ;;  %v1467_v12 = vmul.f32 0.7978846, %v1465_v27 }
 0xafe   : > { %2152 = vtanh.f32 %v1467_v12 }
 0xb06   : > { %v2151_v14 = vpop.eup %2150 }
 0xb07   : > { %v1470_v16 = vadd.f32 1.0, %v2151_v14 }
 0xb08   : > { %v2153_v17 = vpop.eup %2152 }
 0xb09   : > { %v1471_v1 = vadd.f32 1.0, %v2153_v17  ;;  %v1472_v21 = vmul.f32 %v1470_v16, %v1456_v18 }
 0xb0b   : > { %v1473_v20 = vmul.f32 %v1471_v1, %v1457_v19 }
 0xb0d   : > { %v1474_v3 = vpack.c.bf16 %v1473_v20, %v1472_v21 }
 0xb0f   : > { %1955 = vmatmul.mubr.bf16.vlgmr.msra.gmra.mrb[16].mxu0 %v1474_v3 }
 0xbe2   : > { %v1580_v23 = vpop.f32.mrb[16].mxu0 }
 0xbe3   : > { %v1581_v24 = vadd.f32 %v1797_v22, %v1580_v23  ;;  %v1956_v25 = vpop.f32.mrb[17].mxu0 }
 0xbe4   : > { %v1583_v52 = vpop.f32.mrb[18].mxu0 }
 0xbe5   : > { %v1584_v26 = vadd.f32 %v1797_v22, %v1583_v52  ;;  %1593 = vrot.lane.b32.xlu0 %v1581_v24, %s2396_s25  ;;  %v1957_v28 = vpop.f32.mrb[19].mxu0 }
 0xbe7   : > { %1595 = vrot.lane.b32.xlu1 %v1584_v26, %s2396_s25  ;;  %s1812_s25 = sshll.u32 %s2490_s29, 8  ;;  %s2294_s29 = scalar_lea.vmem %s2896_s13, 256 }
 0xbe8   : > { %s2902_s14 = scalar_lea.hbm %s3001_s27, %s1812_s25  ;;  %p2295_p2 = scmp.ne.s32.totalorder %s2896_s13, %s2294_s29 }
 0xbe9   : > { %p2302_p11 = scmp.lt.s32.totalorder %s2300_s21, %s2294_s29 }
 0xbea   : > { %p2296_p4 = pnand %p2295_p2, %p3003_p3 }
 0xbeb   : > { %p2303_p13 = por %p2302_p11, %p2301_p8 }
 0xbec   : > { %p2297_p7 = pneg %p2296_p4 }
 0xbee   : > { %p2304_p1 = pnand %p2303_p13, %p2297_p7 }
 0xc57   : > { %v1594_v33 = vpop.permute.xlu0 %1593 }
 0xc58   : > { %v1599_v34 = vmul.f32 %v1594_v33, %v1590_v32 }
 0xc59   : > { %v1596_v35 = vpop.permute.xlu1 %1595 }
 0xc5a   : > { %1603 = vrot.lane.b32.xlu1 %v1599_v34, %s2382_s17  ;;  %v1600_v37 = vmul.f32 %v1596_v35, %v1590_v32 }
 0xc5e   : > { %1605 = vrot.lane.b32.xlu1 %v1600_v37, %s2382_s17 }
 0xccc   : > { %v1604_v38 = vpop.permute.xlu1 %1603 }
 0xccd   : > { %v1609_v39 = vadd.f32 %v1604_v38, %v2819_v13 }
 0xccf   : > { %1611 = vst.msk [vmem:[%s511_s4] sm:$0xff] %vm568_vm0, %v1609_v39 }
 0xcd0   : > { %v1606_v30 = vpop.permute.xlu1 %1605 }
 0xcd1   : > { %v1610_v40 = vadd.f32 %v1606_v30, %v2822_v15 }
 0xcd3   : > { %1612 = vst.msk [vmem:[%s511_s4 + $0x8] sm:$0xff] %vm568_vm0, %v1610_v40 }
 0xcd4   : > { %2307 = shalt.err (!%p2304_p1)
}
 0xcd5   : > { %s2308_s16 = scalar_lea.hbm %s2902_s14, 256  ;;  %s2312_s28 = scalar_lea.hbm %s3002_s22, 512 }
 0xcd6   : > { %p2309_p0 = scmp.ne.s32.totalorder %s2902_s14, %s2308_s16  ;;  %p2313_p9 = scmp.lt.u32.totalorder %s2902_s14, %s3002_s22 }
 0xcd7   : > { %p2314_p12 = scmp.lt.u32.totalorder %s2312_s28, %s2308_s16  ;;  %p2316_p2 = scmp.lt.u32.totalorder %s2308_s16, %s2902_s14 }
 0xcd8   : > { %p2310_p6 = pnand %p2309_p0, %p3003_p3 }
 0xcd9   : > { %p2315_p10 = por %p2314_p12, %p2313_p9 }
 0xcda   : > { %p2311_p5 = pneg %p2310_p6 }
 0xcdb   : > { %p2317_p4 = por %p2316_p2, %p2315_p10 }
 0xcdd   : > { %p2318_p7 = pnand %p2317_p4, %p2311_p5 }
 0xcdf   : > { %2321 = shalt.err (!%p2318_p7)
}
 0xce0   : > { %s2398_s25 = smov 128  }
 0xce1   : > { %1978 = dma.vmem_to_hbm [thread:$0]  (%p3003_p3), %s2896_s13, 256, %s2902_s14, %s2905_s20, %s2398_s25, %s2398_s25, %s2393_s19  }
 0xce2 PF: > { %s3004_s17 = sld [smem:[#allocation19_spill]]  ;;  %s3005_s15 = sld [smem:[#allocation16_spill]] }
 0xce3   : > { %s3006_s27 = sld [smem:[#allocation23_spill]] }
 0xce8   : > { %p2010_p8 = scmp.ge.s32.totalorder %s3004_s17, 2  ;;  %s1642_s29 = sand.u32 1, %s3005_s15  }
 0xce9   : > { %p3007_p11 = scmp.ne.s32.totalorder %s3006_s27, 0  ;;  %s1643_s30 = scalar_lea.sflag [#allocation4], %s1642_s29 }
 0xceb   : > { %p1997_p13 = pnand %p2010_p8, %p3007_p11 }
 0xced   : > { %2351 = dma.done.wait (!%p1997_p13), %s1643_s30, 256  }
 0xcee   : > { %2353 = vsyncadd (!%p1997_p13), %s1643_s30, 4294967040  ;;  %s3008_s28 = sld [smem:[#allocation20_spill]]  ;;  %s3009_s25 = sld [smem:[#allocation17_spill]] }
 0xcef   : > { %s3010_s26 = sld [smem:[#allocation18_spill]]  ;;  %s3011_s27 = sld [smem:[#allocation21_spill]] }
 0xcf4   : > { %p26_p1 = scmp.ge.s32.totalorder %s3008_s28, 4  }
 0xcf6   :  { %28 = sbr.rel (!%p26_p1) target bundleno = 10 (0xa), region = 134 }
 0xcfd   :  { %1648 = vsyncpa [#allocation3], 1 }
 0xcfe   :  { %1650 = vsyncpa [#allocation3 + $0x1], 1 }
 0xcff   :  { %1651 = vsyncpa [#allocation6], 1 }
 0xd00   :  { %1652 = vsyncpa [#allocation9], 1 }
 0xd01   :  { %1653 = vsyncpa [#allocation4], 1 }
 0xd02   :  { %1655 = vsyncpa [#allocation4 + $0x1], 1 }

</bundles_post_ra>
